<compile_context>
chip_gen: v6e
topology: v6e:2x2x1
jax: 0.10.0
libtpu: 0.0.40
codegen_flags: <defaults>
</compile_context>

<pallas_src>
import numpy as np
import jax
import jax.numpy as jnp
from jax import lax
from jax.experimental import pallas as pl

# ----------------------------- sizes -----------------------------------------
N_AGENTS = 4          # args.agent_num
BATCH = 8             # batch size
OBS = 24              # args.obs_size
ACT = 8               # args.action_dim
IDIM = OBS + ACT      # encoder input dim (= 32)
HID = 32              # args.hid_size
HEADS = 4             # args.attend_heads
ADIM = HID // HEADS   # attend dim per head
NB = N_AGENTS * BATCH # 32 rows: agents folded onto the sublane axis
OUT_LANES = 128       # lane-dense output slab width

REG_COEF = 0.001 * ADIM / (BATCH * (N_AGENTS - 1))

# packed-buffer row offsets (multiples of 16 so bf16 sublane slices stay aligned)
R_WES, R_BES, R_WKVS, R_BKVS = 0, 128, 160, 224
R_HSUM, R_HEXP, R_PICK, R_QBB = 240, 272, 288, 320
P1_ROWS, P1_LANES = 352, 128
R_WC1, R_BC1, R_WQBT = 0, 96, 128
P2_ROWS, P2_LANES = 144, 256


# ----------------------------- fused kernel ----------------------------------
def fused_critic_kernel(x_ref, p1_ref, p2_ref, out_ref):
    f32 = jnp.float32
    bf16 = jnp.bfloat16

    def dot(a, b):  # bf16 operands (single MXU pass), f32 accumulate
        return jnp.dot(a.astype(bf16), b.astype(bf16), preferred_element_type=f32)

    def leaky(v):
        return jnp.where(v >= 0, v, 0.01 * v)

    # ---- unpack packed parameter buffers (static, tile-aligned ref slices) ----
    w_es = p1_ref[R_WES:R_WES + N_AGENTS * IDIM, 0:2 * HID]      # (128, 64) block-diag enc|senc
    b_es = p1_ref[R_BES:R_BES + NB, 0:2 * HID]                   # (32, 64)  per-row bias
    w_kvs = p1_ref[R_WKVS:R_WKVS + 2 * HID, 0:3 * HID]           # (64, 96)  key|val|sel*scale
    b_kvs = p1_ref[R_BKVS:R_BKVS + 1, 0:3 * HID]                 # (1, 96)
    hsum = p1_ref[R_HSUM:R_HSUM + HID, 0:HEADS]                  # (32, 4) head segment-sum
    hexp = p1_ref[R_HEXP:R_HEXP + HEADS, 0:HID]                  # (4, 32) head expand
    pick = p1_ref[R_PICK:R_PICK + NB, 0:N_AGENTS]                # (32, 4) row-block one-hot
    qb_b = p1_ref[R_QBB:R_QBB + NB, 0:1]                         # (32, 1) cb2 - bb2 per row
    w_c1 = p2_ref[R_WC1:R_WC1 + 3 * HID, :]                      # (96, 256) fc1 (all agents)
    b_c1 = p2_ref[R_BC1:R_BC1 + NB, :]                           # (32, 256)
    w_qbT = p2_ref[R_WQBT:R_WQBT + N_AGENTS, :]                  # (4, 256)  fc2 (q & -bias merged)

    # ---- stage 1: both per-agent encoders as ONE block-diagonal matmul (K=128) ----
    es = leaky(dot(x_ref[...], w_es) + b_es)                     # (NB, 64) = [enc | senc]

    # ---- stage 2: keys / values / (pre-scaled) selectors in ONE matmul ----
    kvs = dot(es, w_kvs) + b_kvs                                 # (NB, 96)
    keys = kvs[:, 0:HID]
    vals = leaky(kvs[:, HID:2 * HID])
    sels = kvs[:, 2 * HID:3 * HID]                               # already scaled by 1/sqrt(ADIM)

    # ---- attention: per selector agent; other agents handled per 8-row block ----
    other_blocks, ssq_blocks = [], []
    for i in range(N_AGENTS):                                    # static unroll (4)
        sel_i = sels[i * BATCH:(i + 1) * BATCH, :]               # (B, HID)
        others = [j for j in range(N_AGENTS) if j != i]
        s_list = [dot(keys[j * BATCH:(j + 1) * BATCH, :] * sel_i, hsum) for j in others]
        m = s_list[0]
        for s in s_list[1:]:
            m = jnp.maximum(m, s)                                # (B, HEADS)
        e_list = [jnp.exp(s - m) for s in s_list]
        denom = e_list[0]
        for e in e_list[1:]:
            denom = denom + e
        rden = 1.0 / denom                                       # (B, HEADS)
        acc = None
        for e, j in zip(e_list, others):
            contrib = dot(e * rden, hexp) * vals[j * BATCH:(j + 1) * BATCH, :]
            acc = contrib if acc is None else acc + contrib      # (B, HID)
        other_blocks.append(acc)
        ssq = s_list[0] * s_list[0]
        for s in s_list[1:]:
            ssq = ssq + s * s
        ssq_blocks.append(ssq)                                   # (B, HEADS) scaled-logit^2 sums

    other_all = jnp.concatenate(other_blocks, axis=0)            # (NB, HID)
    ssq_all = jnp.concatenate(ssq_blocks, axis=0)                # (NB, HEADS)

    # ---- critic + bias heads for all agents: two fat matmuls + per-row column pick ----
    cin = jnp.concatenate([es, other_all], axis=1)               # (NB, 96) = [enc|senc|other]
    h1 = leaky(dot(cin, w_c1) + b_c1)                            # (NB, 256) = [h1_all | bh_all]
    qb4 = lax.dot_general(h1.astype(jnp.bfloat16), w_qbT.astype(jnp.bfloat16),
                          dimension_numbers=(((1,), (1,)), ((), ())),
                          preferred_element_type=f32)            # (NB, N_AGENTS)
    qmb = jnp.sum(qb4 * pick, axis=1, keepdims=True) + qb_b      # (NB, 1) = q - bias

    # ---- single lane-dense output slab: [q-b | reg partials (4) | zero pad] ----
    out_ref[...] = jnp.concatenate(
        [qmb, ssq_all, jnp.zeros((NB, OUT_LANES - 1 - HEADS), f32)], axis=1)


# ----------------------------- parameter packing ------------------------------
def pack_params(params):
    """Pack all module weights into two flat bf16 buffers (2 operand DMAs)."""
    f32 = jnp.float32
    scale = 1.0 / np.sqrt(ADIM)

    # stage-1 block-diagonal weights / per-row biases
    w_es = jnp.zeros((N_AGENTS * IDIM, 2 * HID), f32)
    b_es = jnp.zeros((NB, 2 * HID), f32)
    for i in range(N_AGENTS):
        r = i * IDIM
        w_es = w_es.at[r:r + IDIM, 0:HID].set(params["enc_W"][i])
        w_es = w_es.at[r:r + OBS, HID:2 * HID].set(params["senc_W"][i])  # senc uses obs lanes only
        b_es = b_es.at[i * BATCH:(i + 1) * BATCH, 0:HID].set(
            jnp.broadcast_to(params["enc_b"][i], (BATCH, HID)))
        b_es = b_es.at[i * BATCH:(i + 1) * BATCH, HID:2 * HID].set(
            jnp.broadcast_to(params["senc_b"][i], (BATCH, HID)))

    # stage-2: [enc | senc] -> [keys | vals_pre | sels * 1/sqrt(ADIM)]
    w_kvs = jnp.zeros((2 * HID, 3 * HID), f32)
    w_kvs = w_kvs.at[0:HID, 0:HID].set(params["key_W"])
    w_kvs = w_kvs.at[0:HID, HID:2 * HID].set(params["val_W"])
    w_kvs = w_kvs.at[HID:2 * HID, 2 * HID:3 * HID].set(params["sel_W"] * scale)
    b_kvs = jnp.zeros((1, 3 * HID), f32).at[:, HID:2 * HID].set(params["val_b"])

    # head one-hots and row-block pick (pure constants, hoisted out of the kernel)
    hsum = (np.arange(HID)[:, None] // ADIM == np.arange(HEADS)[None, :]).astype(np.float32)
    hexp = hsum.T
    pick = (np.arange(NB)[:, None] // BATCH == np.arange(N_AGENTS)[None, :]).astype(np.float32)

    # critic/bias fc1 for all agents + merged fc2 (q uses +critic_W2, bias uses -bias_W2)
    w_c1 = jnp.zeros((3 * HID, 8 * HID), f32)
    b_c1 = jnp.zeros((NB, 8 * HID), f32)
    w_qb = jnp.zeros((8 * HID, N_AGENTS), f32)
    qb_b = jnp.zeros((NB, 1), f32)
    for i in range(N_AGENTS):
        c = i * HID                      # agent-i slot in the h1 half
        cb = 4 * HID + i * HID           # agent-i slot in the bias-head half
        w_c1 = w_c1.at[0:HID, c:c + HID].set(params["critic_W1"][i][:HID])            # enc rows
        w_c1 = w_c1.at[2 * HID:3 * HID, c:c + HID].set(params["critic_W1"][i][HID:])  # other rows
        w_c1 = w_c1.at[HID:2 * HID, cb:cb + HID].set(params["bias_W1"][i])            # senc rows
        b_c1 = b_c1.at[i * BATCH:(i + 1) * BATCH, c:c + HID].set(
            jnp.broadcast_to(params["critic_b1"][i], (BATCH, HID)))
        b_c1 = b_c1.at[i * BATCH:(i + 1) * BATCH, cb:cb + HID].set(
            jnp.broadcast_to(params["bias_b1"][i], (BATCH, HID)))
        w_qb = w_qb.at[c:c + HID, i].set(params["critic_W2"][i][:, 0])
        w_qb = w_qb.at[cb:cb + HID, i].set(-params["bias_W2"][i][:, 0])
        qb_b = qb_b.at[i * BATCH:(i + 1) * BATCH, 0].set(
            params["critic_b2"][i, 0, 0] - params["bias_b2"][i, 0, 0])

    def place(buf, r, arr):
        return buf.at[r:r + arr.shape[0], 0:arr.shape[1]].set(arr)

    p1 = jnp.zeros((P1_ROWS, P1_LANES), f32)
    p1 = place(p1, R_WES, w_es)
    p1 = place(p1, R_BES, b_es)
    p1 = place(p1, R_WKVS, w_kvs)
    p1 = place(p1, R_BKVS, b_kvs)
    p1 = place(p1, R_HSUM, jnp.asarray(hsum))
    p1 = place(p1, R_HEXP, jnp.asarray(hexp))
    p1 = place(p1, R_PICK, jnp.asarray(pick))
    p1 = place(p1, R_QBB, qb_b)

    p2 = jnp.zeros((P2_ROWS, P2_LANES), f32)
    p2 = place(p2, R_WC1, w_c1)
    p2 = place(p2, R_BC1, b_c1)
    p2 = place(p2, R_WQBT, w_qb.T)

    return p1.astype(jnp.bfloat16), p2.astype(jnp.bfloat16)


# ----------------------------- wrapper ---------------------------------------
@jax.jit
def attention_critic_forward(sa, p1, p2):
    # block-diagonal data layout: agent i's (obs|act) features in lanes [i*IDIM, (i+1)*IDIM)
    eye = jnp.eye(N_AGENTS, dtype=sa.dtype)
    x_bd = (sa[:, :, None, :] * eye[:, None, :, None]).reshape(NB, N_AGENTS * IDIM)

    out = pl.pallas_call(
        fused_critic_kernel,
        out_shape=jax.ShapeDtypeStruct((NB, OUT_LANES), jnp.float32),
    )(x_bd, p1, p2)

    qmb = out[:, 0].reshape(N_AGENTS, BATCH, 1)                               # q - bias
    reg = (REG_COEF * out[:, 1:1 + HEADS].reshape(N_AGENTS, BATCH * HEADS).sum(axis=1)
           ).reshape(N_AGENTS, 1, 1)                                          # attention-mag reg
    return qmb, reg


# ----------------------------- pure-JAX reference (f32, highest precision) ---
def reference_forward(states, sa, params):
    HP = lax.Precision.HIGHEST

    def leaky(x):
        return jnp.where(x >= 0, x, 0.01 * x)

    sa_enc = leaky(jnp.einsum("nbi,nih->nbh", sa, params["enc_W"], precision=HP) + params["enc_b"])
    s_enc = leaky(jnp.einsum("nbs,nsh->nbh", states, params["senc_W"], precision=HP) + params["senc_b"])
    keys = jnp.einsum("nbh,hk->nbk", sa_enc, params["key_W"], precision=HP)
    vals = leaky(jnp.einsum("nbh,hk->nbk", sa_enc, params["val_W"], precision=HP) + params["val_b"])
    sels = jnp.einsum("nbh,hk->nbk", s_enc, params["sel_W"], precision=HP)
    keys = keys.reshape(N_AGENTS, BATCH, HEADS, ADIM)
    vals = vals.reshape(N_AGENTS, BATCH, HEADS, ADIM)
    sels = sels.reshape(N_AGENTS, BATCH, HEADS, ADIM)

    qmb_list, reg_list = [], []
    for i in range(N_AGENTS):
        others = jnp.array([j for j in range(N_AGENTS) if j != i])
        other_vals, reg_sum = [], 0.0
        for h in range(HEADS):
            k_o = keys[others, :, h, :]                        # (N-1, B, D)
            v_o = vals[others, :, h, :]
            sel = sels[i, :, h, :]                             # (B, D)
            logits = jnp.einsum("bd,jbd->bj", sel, k_o, precision=HP)
            w = jax.nn.softmax(logits / np.sqrt(ADIM), axis=-1)
            other_vals.append(jnp.einsum("bj,jbd->bd", w, v_o, precision=HP))
            reg_sum = reg_sum + jnp.mean(logits ** 2)
        critic_in = jnp.concatenate([sa_enc[i]] + other_vals, axis=1)
        h1 = leaky(jnp.matmul(critic_in, params["critic_W1"][i], precision=HP) + params["critic_b1"][i, 0])
        q = jnp.matmul(h1, params["critic_W2"][i], precision=HP) + params["critic_b2"][i, 0]
        bh = leaky(jnp.matmul(s_enc[i], params["bias_W1"][i], precision=HP) + params["bias_b1"][i, 0])
        b = jnp.matmul(bh, params["bias_W2"][i], precision=HP) + params["bias_b2"][i, 0]
        qmb_list.append(q - b)
        reg_list.append(0.001 * reg_sum)
    return jnp.stack(qmb_list), jnp.stack(reg_list).reshape(N_AGENTS, 1, 1)


# ----------------------------- deterministic params --------------------------
def init_params(key):
    ks = jax.random.split(key, 20)
    f32 = jnp.float32

    def w(k, shape, fan_in):
        return (jax.random.normal(k, shape, f32) / np.sqrt(fan_in)).astype(f32)

    return {
        "enc_W": w(ks[0], (N_AGENTS, IDIM, HID), IDIM),
        "enc_b": 0.1 * jax.random.normal(ks[1], (N_AGENTS, 1, HID), f32),
        "senc_W": w(ks[2], (N_AGENTS, OBS, HID), OBS),
        "senc_b": 0.1 * jax.random.normal(ks[3], (N_AGENTS, 1, HID), f32),
        "key_W": w(ks[4], (HID, HID), HID),     # HEADS heads, each (HID, ADIM), concat on cols
        "sel_W": w(ks[5], (HID, HID), HID),
        "val_W": w(ks[6], (HID, HID), HID),
        "val_b": 0.1 * jax.random.normal(ks[7], (1, HID), f32),
        "critic_W1": w(ks[8], (N_AGENTS, 2 * HID, HID), 2 * HID),
        "critic_b1": 0.1 * jax.random.normal(ks[9], (N_AGENTS, 1, HID), f32),
        "critic_W2": w(ks[10], (N_AGENTS, HID, 1), HID),
        "critic_b2": 0.1 * jax.random.normal(ks[11], (N_AGENTS, 1, 1), f32),
        "bias_W1": w(ks[12], (N_AGENTS, HID, HID), HID),
        "bias_b1": 0.1 * jax.random.normal(ks[13], (N_AGENTS, 1, HID), f32),
        "bias_W2": w(ks[14], (N_AGENTS, HID, 1), HID),
        "bias_b2": 0.1 * jax.random.normal(ks[15], (N_AGENTS, 1, 1), f32),
    }


# ----------------------------- main -------------------------------------------
if __name__ == "__main__":
    key = jax.random.PRNGKey(0)
    k_s, k_a, k_p = jax.random.split(key, 3)
    states = jax.random.normal(k_s, (N_AGENTS, BATCH, OBS), jnp.float32)
    actions = jax.random.normal(k_a, (N_AGENTS, BATCH, ACT), jnp.float32)
    sa = jnp.concatenate([states, actions], axis=-1)           # (N, B, OBS+ACT)
    params = init_params(k_p)

    p1, p2 = pack_params(params)                               # one-time weight packing
    qmb, reg = attention_critic_forward(sa, p1, p2)
    jax.block_until_ready((qmb, reg))

    # correctness vs. an f32 highest-precision reference (bf16 matmul operands in
    # the kernel are a deliberate accuracy/perf trade -> relaxed tolerances)
    qmb_ref, reg_ref = reference_forward(states, sa, params)
    np.testing.assert_allclose(np.asarray(qmb), np.asarray(qmb_ref), atol=3e-2, rtol=3e-2)
    np.testing.assert_allclose(np.asarray(reg), np.asarray(reg_ref), atol=1e-3, rtol=5e-2)

    print("KERNEL_OK")
</pallas_src>

<mosaic_0001>
module attributes {stable_mosaic.version = 11 : i64} {
  func.func @fused_critic_kernel(%arg0: memref<32x128xf32, #tpu.memory_space<vmem>>, %arg1: memref<352x128xbf16, #tpu.memory_space<vmem>>, %arg2: memref<144x256xbf16, #tpu.memory_space<vmem>>, %arg3: memref<32x128xf32, #tpu.memory_space<vmem>>) attributes {dimension_semantics = [], scalar_prefetch = 0 : i64, scratch_operands = 0 : i64, tpu.core_type = #tpu.core_type<tc>} {
    %c0 = arith.constant 0 : index
    %c0_0 = arith.constant 0 : index
    %0 = vector.load %arg1[%c0, %c0_0] : memref<352x128xbf16, #tpu.memory_space<vmem>>, vector<128x64xbf16>
    %c128 = arith.constant 128 : index
    %c0_1 = arith.constant 0 : index
    %1 = vector.load %arg1[%c128, %c0_1] : memref<352x128xbf16, #tpu.memory_space<vmem>>, vector<32x64xbf16>
    %c160 = arith.constant 160 : index
    %c0_2 = arith.constant 0 : index
    %2 = vector.load %arg1[%c160, %c0_2] : memref<352x128xbf16, #tpu.memory_space<vmem>>, vector<64x96xbf16>
    %c224 = arith.constant 224 : index
    %c0_3 = arith.constant 0 : index
    %3 = vector.load %arg1[%c224, %c0_3] : memref<352x128xbf16, #tpu.memory_space<vmem>>, vector<1x96xbf16>
    %c240 = arith.constant 240 : index
    %c0_4 = arith.constant 0 : index
    %4 = vector.load %arg1[%c240, %c0_4] : memref<352x128xbf16, #tpu.memory_space<vmem>>, vector<32x4xbf16>
    %c272 = arith.constant 272 : index
    %c0_5 = arith.constant 0 : index
    %5 = vector.load %arg1[%c272, %c0_5] : memref<352x128xbf16, #tpu.memory_space<vmem>>, vector<4x32xbf16>
    %c288 = arith.constant 288 : index
    %c0_6 = arith.constant 0 : index
    %6 = vector.load %arg1[%c288, %c0_6] : memref<352x128xbf16, #tpu.memory_space<vmem>>, vector<32x4xbf16>
    %c320 = arith.constant 320 : index
    %c0_7 = arith.constant 0 : index
    %7 = vector.load %arg1[%c320, %c0_7] : memref<352x128xbf16, #tpu.memory_space<vmem>>, vector<32x1xbf16>
    %c0_8 = arith.constant 0 : index
    %c0_9 = arith.constant 0 : index
    %8 = vector.load %arg2[%c0_8, %c0_9] : memref<144x256xbf16, #tpu.memory_space<vmem>>, vector<96x256xbf16>
    %c96 = arith.constant 96 : index
    %c0_10 = arith.constant 0 : index
    %9 = vector.load %arg2[%c96, %c0_10] : memref<144x256xbf16, #tpu.memory_space<vmem>>, vector<32x256xbf16>
    %c128_11 = arith.constant 128 : index
    %c0_12 = arith.constant 0 : index
    %10 = vector.load %arg2[%c128_11, %c0_12] : memref<144x256xbf16, #tpu.memory_space<vmem>>, vector<4x256xbf16>
    %c0_13 = arith.constant 0 : index
    %c0_14 = arith.constant 0 : index
    %11 = vector.load %arg0[%c0_13, %c0_14] : memref<32x128xf32, #tpu.memory_space<vmem>>, vector<32x128xf32>
    %12 = arith.truncf %11 : vector<32x128xf32> to vector<32x128xbf16>
    %cst = arith.constant dense<0.000000e+00> : vector<32x64xf32>
    %13 = tpu.matmul %12, %0, %cst {dimension_numbers = #tpu.dot_dimension_numbers<[1], [0], [0], [1], [0, 0, 1, 1], [], []>} : vector<32x128xbf16>, vector<128x64xbf16>, vector<32x64xf32> -> vector<32x64xf32>
    %14 = arith.extf %1 : vector<32x64xbf16> to vector<32x64xf32>
    %15 = arith.addf %13, %14 : vector<32x64xf32>
    %cst_15 = arith.constant 0.000000e+00 : f32
    %16 = vector.broadcast %cst_15 : f32 to vector<32x64xf32>
    %17 = arith.cmpf oge, %15, %16 : vector<32x64xf32>
    %cst_16 = arith.constant 0.00999999977 : f32
    %18 = vector.broadcast %cst_16 : f32 to vector<32x64xf32>
    %19 = arith.mulf %18, %15 : vector<32x64xf32>
    %20 = arith.select %17, %15, %19 : vector<32x64xi1>, vector<32x64xf32>
    %21 = arith.truncf %20 : vector<32x64xf32> to vector<32x64xbf16>
    %cst_17 = arith.constant dense<0.000000e+00> : vector<32x96xf32>
    %22 = tpu.matmul %21, %2, %cst_17 {dimension_numbers = #tpu.dot_dimension_numbers<[1], [0], [0], [1], [0, 0, 1, 1], [], []>} : vector<32x64xbf16>, vector<64x96xbf16>, vector<32x96xf32> -> vector<32x96xf32>
    %23 = arith.extf %3 : vector<1x96xbf16> to vector<1x96xf32>
    %24 = vector.broadcast %23 : vector<1x96xf32> to vector<32x96xf32>
    %25 = arith.addf %22, %24 : vector<32x96xf32>
    %26 = vector.extract_strided_slice %25 {offsets = [0, 0], sizes = [32, 32], strides = [1, 1]} : vector<32x96xf32> to vector<32x32xf32>
    %27 = vector.extract_strided_slice %25 {offsets = [0, 32], sizes = [32, 32], strides = [1, 1]} : vector<32x96xf32> to vector<32x32xf32>
    %cst_18 = arith.constant 0.000000e+00 : f32
    %28 = vector.broadcast %cst_18 : f32 to vector<32x32xf32>
    %29 = arith.cmpf oge, %27, %28 : vector<32x32xf32>
    %cst_19 = arith.constant 0.00999999977 : f32
    %30 = vector.broadcast %cst_19 : f32 to vector<32x32xf32>
    %31 = arith.mulf %30, %27 : vector<32x32xf32>
    %32 = arith.select %29, %27, %31 : vector<32x32xi1>, vector<32x32xf32>
    %33 = vector.extract_strided_slice %25 {offsets = [0, 64], sizes = [32, 32], strides = [1, 1]} : vector<32x96xf32> to vector<32x32xf32>
    %34 = vector.extract_strided_slice %33 {offsets = [0, 0], sizes = [8, 32], strides = [1, 1]} : vector<32x32xf32> to vector<8x32xf32>
    %35 = vector.extract_strided_slice %26 {offsets = [8, 0], sizes = [8, 32], strides = [1, 1]} : vector<32x32xf32> to vector<8x32xf32>
    %36 = arith.mulf %35, %34 : vector<8x32xf32>
    %37 = arith.truncf %36 : vector<8x32xf32> to vector<8x32xbf16>
    %cst_20 = arith.constant dense<0.000000e+00> : vector<8x4xf32>
    %38 = tpu.matmul %37, %4, %cst_20 {dimension_numbers = #tpu.dot_dimension_numbers<[1], [0], [0], [1], [0, 0, 1, 1], [], []>} : vector<8x32xbf16>, vector<32x4xbf16>, vector<8x4xf32> -> vector<8x4xf32>
    %39 = vector.extract_strided_slice %26 {offsets = [16, 0], sizes = [8, 32], strides = [1, 1]} : vector<32x32xf32> to vector<8x32xf32>
    %40 = arith.mulf %39, %34 : vector<8x32xf32>
    %41 = arith.truncf %40 : vector<8x32xf32> to vector<8x32xbf16>
    %cst_21 = arith.constant dense<0.000000e+00> : vector<8x4xf32>
    %42 = tpu.matmul %41, %4, %cst_21 {dimension_numbers = #tpu.dot_dimension_numbers<[1], [0], [0], [1], [0, 0, 1, 1], [], []>} : vector<8x32xbf16>, vector<32x4xbf16>, vector<8x4xf32> -> vector<8x4xf32>
    %43 = vector.extract_strided_slice %26 {offsets = [24, 0], sizes = [8, 32], strides = [1, 1]} : vector<32x32xf32> to vector<8x32xf32>
    %44 = arith.mulf %43, %34 : vector<8x32xf32>
    %45 = arith.truncf %44 : vector<8x32xf32> to vector<8x32xbf16>
    %cst_22 = arith.constant dense<0.000000e+00> : vector<8x4xf32>
    %46 = tpu.matmul %45, %4, %cst_22 {dimension_numbers = #tpu.dot_dimension_numbers<[1], [0], [0], [1], [0, 0, 1, 1], [], []>} : vector<8x32xbf16>, vector<32x4xbf16>, vector<8x4xf32> -> vector<8x4xf32>
    %47 = arith.maximumf %38, %42 : vector<8x4xf32>
    %48 = arith.maximumf %47, %46 : vector<8x4xf32>
    %49 = arith.subf %38, %48 : vector<8x4xf32>
    %50 = math.exp %49 : vector<8x4xf32>
    %51 = arith.subf %42, %48 : vector<8x4xf32>
    %52 = math.exp %51 : vector<8x4xf32>
    %53 = arith.subf %46, %48 : vector<8x4xf32>
    %54 = math.exp %53 : vector<8x4xf32>
    %55 = arith.addf %50, %52 : vector<8x4xf32>
    %56 = arith.addf %55, %54 : vector<8x4xf32>
    %cst_23 = arith.constant 1.000000e+00 : f32
    %57 = vector.broadcast %cst_23 : f32 to vector<8x4xf32>
    %58 = arith.divf %57, %56 : vector<8x4xf32>
    %59 = arith.mulf %50, %58 : vector<8x4xf32>
    %60 = arith.truncf %59 : vector<8x4xf32> to vector<8x4xbf16>
    %cst_24 = arith.constant dense<0.000000e+00> : vector<8x32xf32>
    %61 = tpu.matmul %60, %5, %cst_24 {dimension_numbers = #tpu.dot_dimension_numbers<[1], [0], [0], [1], [0, 0, 1, 1], [], []>} : vector<8x4xbf16>, vector<4x32xbf16>, vector<8x32xf32> -> vector<8x32xf32>
    %62 = vector.extract_strided_slice %32 {offsets = [8, 0], sizes = [8, 32], strides = [1, 1]} : vector<32x32xf32> to vector<8x32xf32>
    %63 = arith.mulf %61, %62 : vector<8x32xf32>
    %64 = arith.mulf %52, %58 : vector<8x4xf32>
    %65 = arith.truncf %64 : vector<8x4xf32> to vector<8x4xbf16>
    %cst_25 = arith.constant dense<0.000000e+00> : vector<8x32xf32>
    %66 = tpu.matmul %65, %5, %cst_25 {dimension_numbers = #tpu.dot_dimension_numbers<[1], [0], [0], [1], [0, 0, 1, 1], [], []>} : vector<8x4xbf16>, vector<4x32xbf16>, vector<8x32xf32> -> vector<8x32xf32>
    %67 = vector.extract_strided_slice %32 {offsets = [16, 0], sizes = [8, 32], strides = [1, 1]} : vector<32x32xf32> to vector<8x32xf32>
    %68 = arith.mulf %66, %67 : vector<8x32xf32>
    %69 = arith.addf %63, %68 : vector<8x32xf32>
    %70 = arith.mulf %54, %58 : vector<8x4xf32>
    %71 = arith.truncf %70 : vector<8x4xf32> to vector<8x4xbf16>
    %cst_26 = arith.constant dense<0.000000e+00> : vector<8x32xf32>
    %72 = tpu.matmul %71, %5, %cst_26 {dimension_numbers = #tpu.dot_dimension_numbers<[1], [0], [0], [1], [0, 0, 1, 1], [], []>} : vector<8x4xbf16>, vector<4x32xbf16>, vector<8x32xf32> -> vector<8x32xf32>
    %73 = vector.extract_strided_slice %32 {offsets = [24, 0], sizes = [8, 32], strides = [1, 1]} : vector<32x32xf32> to vector<8x32xf32>
    %74 = arith.mulf %72, %73 : vector<8x32xf32>
    %75 = arith.addf %69, %74 : vector<8x32xf32>
    %76 = arith.mulf %38, %38 : vector<8x4xf32>
    %77 = arith.mulf %42, %42 : vector<8x4xf32>
    %78 = arith.addf %76, %77 : vector<8x4xf32>
    %79 = arith.mulf %46, %46 : vector<8x4xf32>
    %80 = arith.addf %78, %79 : vector<8x4xf32>
    %81 = vector.extract_strided_slice %33 {offsets = [8, 0], sizes = [8, 32], strides = [1, 1]} : vector<32x32xf32> to vector<8x32xf32>
    %82 = vector.extract_strided_slice %26 {offsets = [0, 0], sizes = [8, 32], strides = [1, 1]} : vector<32x32xf32> to vector<8x32xf32>
    %83 = arith.mulf %82, %81 : vector<8x32xf32>
    %84 = arith.truncf %83 : vector<8x32xf32> to vector<8x32xbf16>
    %cst_27 = arith.constant dense<0.000000e+00> : vector<8x4xf32>
    %85 = tpu.matmul %84, %4, %cst_27 {dimension_numbers = #tpu.dot_dimension_numbers<[1], [0], [0], [1], [0, 0, 1, 1], [], []>} : vector<8x32xbf16>, vector<32x4xbf16>, vector<8x4xf32> -> vector<8x4xf32>
    %86 = vector.extract_strided_slice %26 {offsets = [16, 0], sizes = [8, 32], strides = [1, 1]} : vector<32x32xf32> to vector<8x32xf32>
    %87 = arith.mulf %86, %81 : vector<8x32xf32>
    %88 = arith.truncf %87 : vector<8x32xf32> to vector<8x32xbf16>
    %cst_28 = arith.constant dense<0.000000e+00> : vector<8x4xf32>
    %89 = tpu.matmul %88, %4, %cst_28 {dimension_numbers = #tpu.dot_dimension_numbers<[1], [0], [0], [1], [0, 0, 1, 1], [], []>} : vector<8x32xbf16>, vector<32x4xbf16>, vector<8x4xf32> -> vector<8x4xf32>
    %90 = vector.extract_strided_slice %26 {offsets = [24, 0], sizes = [8, 32], strides = [1, 1]} : vector<32x32xf32> to vector<8x32xf32>
    %91 = arith.mulf %90, %81 : vector<8x32xf32>
    %92 = arith.truncf %91 : vector<8x32xf32> to vector<8x32xbf16>
    %cst_29 = arith.constant dense<0.000000e+00> : vector<8x4xf32>
    %93 = tpu.matmul %92, %4, %cst_29 {dimension_numbers = #tpu.dot_dimension_numbers<[1], [0], [0], [1], [0, 0, 1, 1], [], []>} : vector<8x32xbf16>, vector<32x4xbf16>, vector<8x4xf32> -> vector<8x4xf32>
    %94 = arith.maximumf %85, %89 : vector<8x4xf32>
    %95 = arith.maximumf %94, %93 : vector<8x4xf32>
    %96 = arith.subf %85, %95 : vector<8x4xf32>
    %97 = math.exp %96 : vector<8x4xf32>
    %98 = arith.subf %89, %95 : vector<8x4xf32>
    %99 = math.exp %98 : vector<8x4xf32>
    %100 = arith.subf %93, %95 : vector<8x4xf32>
    %101 = math.exp %100 : vector<8x4xf32>
    %102 = arith.addf %97, %99 : vector<8x4xf32>
    %103 = arith.addf %102, %101 : vector<8x4xf32>
    %cst_30 = arith.constant 1.000000e+00 : f32
    %104 = vector.broadcast %cst_30 : f32 to vector<8x4xf32>
    %105 = arith.divf %104, %103 : vector<8x4xf32>
    %106 = arith.mulf %97, %105 : vector<8x4xf32>
    %107 = arith.truncf %106 : vector<8x4xf32> to vector<8x4xbf16>
    %cst_31 = arith.constant dense<0.000000e+00> : vector<8x32xf32>
    %108 = tpu.matmul %107, %5, %cst_31 {dimension_numbers = #tpu.dot_dimension_numbers<[1], [0], [0], [1], [0, 0, 1, 1], [], []>} : vector<8x4xbf16>, vector<4x32xbf16>, vector<8x32xf32> -> vector<8x32xf32>
    %109 = vector.extract_strided_slice %32 {offsets = [0, 0], sizes = [8, 32], strides = [1, 1]} : vector<32x32xf32> to vector<8x32xf32>
    %110 = arith.mulf %108, %109 : vector<8x32xf32>
    %111 = arith.mulf %99, %105 : vector<8x4xf32>
    %112 = arith.truncf %111 : vector<8x4xf32> to vector<8x4xbf16>
    %cst_32 = arith.constant dense<0.000000e+00> : vector<8x32xf32>
    %113 = tpu.matmul %112, %5, %cst_32 {dimension_numbers = #tpu.dot_dimension_numbers<[1], [0], [0], [1], [0, 0, 1, 1], [], []>} : vector<8x4xbf16>, vector<4x32xbf16>, vector<8x32xf32> -> vector<8x32xf32>
    %114 = vector.extract_strided_slice %32 {offsets = [16, 0], sizes = [8, 32], strides = [1, 1]} : vector<32x32xf32> to vector<8x32xf32>
    %115 = arith.mulf %113, %114 : vector<8x32xf32>
    %116 = arith.addf %110, %115 : vector<8x32xf32>
    %117 = arith.mulf %101, %105 : vector<8x4xf32>
    %118 = arith.truncf %117 : vector<8x4xf32> to vector<8x4xbf16>
    %cst_33 = arith.constant dense<0.000000e+00> : vector<8x32xf32>
    %119 = tpu.matmul %118, %5, %cst_33 {dimension_numbers = #tpu.dot_dimension_numbers<[1], [0], [0], [1], [0, 0, 1, 1], [], []>} : vector<8x4xbf16>, vector<4x32xbf16>, vector<8x32xf32> -> vector<8x32xf32>
    %120 = vector.extract_strided_slice %32 {offsets = [24, 0], sizes = [8, 32], strides = [1, 1]} : vector<32x32xf32> to vector<8x32xf32>
    %121 = arith.mulf %119, %120 : vector<8x32xf32>
    %122 = arith.addf %116, %121 : vector<8x32xf32>
    %123 = arith.mulf %85, %85 : vector<8x4xf32>
    %124 = arith.mulf %89, %89 : vector<8x4xf32>
    %125 = arith.addf %123, %124 : vector<8x4xf32>
    %126 = arith.mulf %93, %93 : vector<8x4xf32>
    %127 = arith.addf %125, %126 : vector<8x4xf32>
    %128 = vector.extract_strided_slice %33 {offsets = [16, 0], sizes = [8, 32], strides = [1, 1]} : vector<32x32xf32> to vector<8x32xf32>
    %129 = vector.extract_strided_slice %26 {offsets = [0, 0], sizes = [8, 32], strides = [1, 1]} : vector<32x32xf32> to vector<8x32xf32>
    %130 = arith.mulf %129, %128 : vector<8x32xf32>
    %131 = arith.truncf %130 : vector<8x32xf32> to vector<8x32xbf16>
    %cst_34 = arith.constant dense<0.000000e+00> : vector<8x4xf32>
    %132 = tpu.matmul %131, %4, %cst_34 {dimension_numbers = #tpu.dot_dimension_numbers<[1], [0], [0], [1], [0, 0, 1, 1], [], []>} : vector<8x32xbf16>, vector<32x4xbf16>, vector<8x4xf32> -> vector<8x4xf32>
    %133 = vector.extract_strided_slice %26 {offsets = [8, 0], sizes = [8, 32], strides = [1, 1]} : vector<32x32xf32> to vector<8x32xf32>
    %134 = arith.mulf %133, %128 : vector<8x32xf32>
    %135 = arith.truncf %134 : vector<8x32xf32> to vector<8x32xbf16>
    %cst_35 = arith.constant dense<0.000000e+00> : vector<8x4xf32>
    %136 = tpu.matmul %135, %4, %cst_35 {dimension_numbers = #tpu.dot_dimension_numbers<[1], [0], [0], [1], [0, 0, 1, 1], [], []>} : vector<8x32xbf16>, vector<32x4xbf16>, vector<8x4xf32> -> vector<8x4xf32>
    %137 = vector.extract_strided_slice %26 {offsets = [24, 0], sizes = [8, 32], strides = [1, 1]} : vector<32x32xf32> to vector<8x32xf32>
    %138 = arith.mulf %137, %128 : vector<8x32xf32>
    %139 = arith.truncf %138 : vector<8x32xf32> to vector<8x32xbf16>
    %cst_36 = arith.constant dense<0.000000e+00> : vector<8x4xf32>
    %140 = tpu.matmul %139, %4, %cst_36 {dimension_numbers = #tpu.dot_dimension_numbers<[1], [0], [0], [1], [0, 0, 1, 1], [], []>} : vector<8x32xbf16>, vector<32x4xbf16>, vector<8x4xf32> -> vector<8x4xf32>
    %141 = arith.maximumf %132, %136 : vector<8x4xf32>
    %142 = arith.maximumf %141, %140 : vector<8x4xf32>
    %143 = arith.subf %132, %142 : vector<8x4xf32>
    %144 = math.exp %143 : vector<8x4xf32>
    %145 = arith.subf %136, %142 : vector<8x4xf32>
    %146 = math.exp %145 : vector<8x4xf32>
    %147 = arith.subf %140, %142 : vector<8x4xf32>
    %148 = math.exp %147 : vector<8x4xf32>
    %149 = arith.addf %144, %146 : vector<8x4xf32>
    %150 = arith.addf %149, %148 : vector<8x4xf32>
    %cst_37 = arith.constant 1.000000e+00 : f32
    %151 = vector.broadcast %cst_37 : f32 to vector<8x4xf32>
    %152 = arith.divf %151, %150 : vector<8x4xf32>
    %153 = arith.mulf %144, %152 : vector<8x4xf32>
    %154 = arith.truncf %153 : vector<8x4xf32> to vector<8x4xbf16>
    %cst_38 = arith.constant dense<0.000000e+00> : vector<8x32xf32>
    %155 = tpu.matmul %154, %5, %cst_38 {dimension_numbers = #tpu.dot_dimension_numbers<[1], [0], [0], [1], [0, 0, 1, 1], [], []>} : vector<8x4xbf16>, vector<4x32xbf16>, vector<8x32xf32> -> vector<8x32xf32>
    %156 = vector.extract_strided_slice %32 {offsets = [0, 0], sizes = [8, 32], strides = [1, 1]} : vector<32x32xf32> to vector<8x32xf32>
    %157 = arith.mulf %155, %156 : vector<8x32xf32>
    %158 = arith.mulf %146, %152 : vector<8x4xf32>
    %159 = arith.truncf %158 : vector<8x4xf32> to vector<8x4xbf16>
    %cst_39 = arith.constant dense<0.000000e+00> : vector<8x32xf32>
    %160 = tpu.matmul %159, %5, %cst_39 {dimension_numbers = #tpu.dot_dimension_numbers<[1], [0], [0], [1], [0, 0, 1, 1], [], []>} : vector<8x4xbf16>, vector<4x32xbf16>, vector<8x32xf32> -> vector<8x32xf32>
    %161 = vector.extract_strided_slice %32 {offsets = [8, 0], sizes = [8, 32], strides = [1, 1]} : vector<32x32xf32> to vector<8x32xf32>
    %162 = arith.mulf %160, %161 : vector<8x32xf32>
    %163 = arith.addf %157, %162 : vector<8x32xf32>
    %164 = arith.mulf %148, %152 : vector<8x4xf32>
    %165 = arith.truncf %164 : vector<8x4xf32> to vector<8x4xbf16>
    %cst_40 = arith.constant dense<0.000000e+00> : vector<8x32xf32>
    %166 = tpu.matmul %165, %5, %cst_40 {dimension_numbers = #tpu.dot_dimension_numbers<[1], [0], [0], [1], [0, 0, 1, 1], [], []>} : vector<8x4xbf16>, vector<4x32xbf16>, vector<8x32xf32> -> vector<8x32xf32>
    %167 = vector.extract_strided_slice %32 {offsets = [24, 0], sizes = [8, 32], strides = [1, 1]} : vector<32x32xf32> to vector<8x32xf32>
    %168 = arith.mulf %166, %167 : vector<8x32xf32>
    %169 = arith.addf %163, %168 : vector<8x32xf32>
    %170 = arith.mulf %132, %132 : vector<8x4xf32>
    %171 = arith.mulf %136, %136 : vector<8x4xf32>
    %172 = arith.addf %170, %171 : vector<8x4xf32>
    %173 = arith.mulf %140, %140 : vector<8x4xf32>
    %174 = arith.addf %172, %173 : vector<8x4xf32>
    %175 = vector.extract_strided_slice %33 {offsets = [24, 0], sizes = [8, 32], strides = [1, 1]} : vector<32x32xf32> to vector<8x32xf32>
    %176 = vector.extract_strided_slice %26 {offsets = [0, 0], sizes = [8, 32], strides = [1, 1]} : vector<32x32xf32> to vector<8x32xf32>
    %177 = arith.mulf %176, %175 : vector<8x32xf32>
    %178 = arith.truncf %177 : vector<8x32xf32> to vector<8x32xbf16>
    %cst_41 = arith.constant dense<0.000000e+00> : vector<8x4xf32>
    %179 = tpu.matmul %178, %4, %cst_41 {dimension_numbers = #tpu.dot_dimension_numbers<[1], [0], [0], [1], [0, 0, 1, 1], [], []>} : vector<8x32xbf16>, vector<32x4xbf16>, vector<8x4xf32> -> vector<8x4xf32>
    %180 = vector.extract_strided_slice %26 {offsets = [8, 0], sizes = [8, 32], strides = [1, 1]} : vector<32x32xf32> to vector<8x32xf32>
    %181 = arith.mulf %180, %175 : vector<8x32xf32>
    %182 = arith.truncf %181 : vector<8x32xf32> to vector<8x32xbf16>
    %cst_42 = arith.constant dense<0.000000e+00> : vector<8x4xf32>
    %183 = tpu.matmul %182, %4, %cst_42 {dimension_numbers = #tpu.dot_dimension_numbers<[1], [0], [0], [1], [0, 0, 1, 1], [], []>} : vector<8x32xbf16>, vector<32x4xbf16>, vector<8x4xf32> -> vector<8x4xf32>
    %184 = vector.extract_strided_slice %26 {offsets = [16, 0], sizes = [8, 32], strides = [1, 1]} : vector<32x32xf32> to vector<8x32xf32>
    %185 = arith.mulf %184, %175 : vector<8x32xf32>
    %186 = arith.truncf %185 : vector<8x32xf32> to vector<8x32xbf16>
    %cst_43 = arith.constant dense<0.000000e+00> : vector<8x4xf32>
    %187 = tpu.matmul %186, %4, %cst_43 {dimension_numbers = #tpu.dot_dimension_numbers<[1], [0], [0], [1], [0, 0, 1, 1], [], []>} : vector<8x32xbf16>, vector<32x4xbf16>, vector<8x4xf32> -> vector<8x4xf32>
    %188 = arith.maximumf %179, %183 : vector<8x4xf32>
    %189 = arith.maximumf %188, %187 : vector<8x4xf32>
    %190 = arith.subf %179, %189 : vector<8x4xf32>
    %191 = math.exp %190 : vector<8x4xf32>
    %192 = arith.subf %183, %189 : vector<8x4xf32>
    %193 = math.exp %192 : vector<8x4xf32>
    %194 = arith.subf %187, %189 : vector<8x4xf32>
    %195 = math.exp %194 : vector<8x4xf32>
    %196 = arith.addf %191, %193 : vector<8x4xf32>
    %197 = arith.addf %196, %195 : vector<8x4xf32>
    %cst_44 = arith.constant 1.000000e+00 : f32
    %198 = vector.broadcast %cst_44 : f32 to vector<8x4xf32>
    %199 = arith.divf %198, %197 : vector<8x4xf32>
    %200 = arith.mulf %191, %199 : vector<8x4xf32>
    %201 = arith.truncf %200 : vector<8x4xf32> to vector<8x4xbf16>
    %cst_45 = arith.constant dense<0.000000e+00> : vector<8x32xf32>
    %202 = tpu.matmul %201, %5, %cst_45 {dimension_numbers = #tpu.dot_dimension_numbers<[1], [0], [0], [1], [0, 0, 1, 1], [], []>} : vector<8x4xbf16>, vector<4x32xbf16>, vector<8x32xf32> -> vector<8x32xf32>
    %203 = vector.extract_strided_slice %32 {offsets = [0, 0], sizes = [8, 32], strides = [1, 1]} : vector<32x32xf32> to vector<8x32xf32>
    %204 = arith.mulf %202, %203 : vector<8x32xf32>
    %205 = arith.mulf %193, %199 : vector<8x4xf32>
    %206 = arith.truncf %205 : vector<8x4xf32> to vector<8x4xbf16>
    %cst_46 = arith.constant dense<0.000000e+00> : vector<8x32xf32>
    %207 = tpu.matmul %206, %5, %cst_46 {dimension_numbers = #tpu.dot_dimension_numbers<[1], [0], [0], [1], [0, 0, 1, 1], [], []>} : vector<8x4xbf16>, vector<4x32xbf16>, vector<8x32xf32> -> vector<8x32xf32>
    %208 = vector.extract_strided_slice %32 {offsets = [8, 0], sizes = [8, 32], strides = [1, 1]} : vector<32x32xf32> to vector<8x32xf32>
    %209 = arith.mulf %207, %208 : vector<8x32xf32>
    %210 = arith.addf %204, %209 : vector<8x32xf32>
    %211 = arith.mulf %195, %199 : vector<8x4xf32>
    %212 = arith.truncf %211 : vector<8x4xf32> to vector<8x4xbf16>
    %cst_47 = arith.constant dense<0.000000e+00> : vector<8x32xf32>
    %213 = tpu.matmul %212, %5, %cst_47 {dimension_numbers = #tpu.dot_dimension_numbers<[1], [0], [0], [1], [0, 0, 1, 1], [], []>} : vector<8x4xbf16>, vector<4x32xbf16>, vector<8x32xf32> -> vector<8x32xf32>
    %214 = vector.extract_strided_slice %32 {offsets = [16, 0], sizes = [8, 32], strides = [1, 1]} : vector<32x32xf32> to vector<8x32xf32>
    %215 = arith.mulf %213, %214 : vector<8x32xf32>
    %216 = arith.addf %210, %215 : vector<8x32xf32>
    %217 = arith.mulf %179, %179 : vector<8x4xf32>
    %218 = arith.mulf %183, %183 : vector<8x4xf32>
    %219 = arith.addf %217, %218 : vector<8x4xf32>
    %220 = arith.mulf %187, %187 : vector<8x4xf32>
    %221 = arith.addf %219, %220 : vector<8x4xf32>
    %222 = tpu.concatenate %75, %122, %169, %216 in 0 : vector<8x32xf32>, vector<8x32xf32>, vector<8x32xf32>, vector<8x32xf32> -> vector<32x32xf32>
    %223 = tpu.concatenate %80, %127, %174, %221 in 0 : vector<8x4xf32>, vector<8x4xf32>, vector<8x4xf32>, vector<8x4xf32> -> vector<32x4xf32>
    %224 = tpu.concatenate %20, %222 in 1 : vector<32x64xf32>, vector<32x32xf32> -> vector<32x96xf32>
    %225 = arith.truncf %224 : vector<32x96xf32> to vector<32x96xbf16>
    %cst_48 = arith.constant dense<0.000000e+00> : vector<32x256xf32>
    %226 = tpu.matmul %225, %8, %cst_48 {dimension_numbers = #tpu.dot_dimension_numbers<[1], [0], [0], [1], [0, 0, 1, 1], [], []>} : vector<32x96xbf16>, vector<96x256xbf16>, vector<32x256xf32> -> vector<32x256xf32>
    %227 = arith.extf %9 : vector<32x256xbf16> to vector<32x256xf32>
    %228 = arith.addf %226, %227 : vector<32x256xf32>
    %cst_49 = arith.constant 0.000000e+00 : f32
    %229 = vector.broadcast %cst_49 : f32 to vector<32x256xf32>
    %230 = arith.cmpf oge, %228, %229 : vector<32x256xf32>
    %cst_50 = arith.constant 0.00999999977 : f32
    %231 = vector.broadcast %cst_50 : f32 to vector<32x256xf32>
    %232 = arith.mulf %231, %228 : vector<32x256xf32>
    %233 = arith.select %230, %228, %232 : vector<32x256xi1>, vector<32x256xf32>
    %234 = arith.truncf %233 : vector<32x256xf32> to vector<32x256xbf16>
    %cst_51 = arith.constant dense<0.000000e+00> : vector<32x4xf32>
    %235 = tpu.matmul %234, %10, %cst_51 {dimension_numbers = #tpu.dot_dimension_numbers<[1], [1], [0], [0], [0, 0, 1, 0], [], []>} : vector<32x256xbf16>, vector<4x256xbf16>, vector<32x4xf32> -> vector<32x4xf32>
    %236 = arith.extf %6 : vector<32x4xbf16> to vector<32x4xf32>
    %237 = arith.mulf %235, %236 : vector<32x4xf32>
    %cst_52 = arith.constant dense<0.000000e+00> : vector<32xf32>
    %238 = vector.multi_reduction <add>, %237, %cst_52 [1] : vector<32x4xf32> to vector<32xf32>
    %239 = vector.shape_cast %238 : vector<32xf32> to vector<32x1xf32>
    %240 = arith.extf %7 : vector<32x1xbf16> to vector<32x1xf32>
    %241 = arith.addf %239, %240 : vector<32x1xf32>
    %cst_53 = arith.constant 0.000000e+00 : f32
    %242 = vector.broadcast %cst_53 : f32 to vector<32x123xf32>
    %243 = tpu.concatenate %241, %223, %242 in 1 : vector<32x1xf32>, vector<32x4xf32>, vector<32x123xf32> -> vector<32x128xf32>
    %c0_54 = arith.constant 0 : index
    %c0_55 = arith.constant 0 : index
    %244 = vector.load %arg3[%c0_54, %c0_55] : memref<32x128xf32, #tpu.memory_space<vmem>>, vector<32x128xf32>
    tpu.vector_store %arg3[%c0_54, %c0_55], %243 {strides = array<i32>} : memref<32x128xf32, #tpu.memory_space<vmem>>, vector<32x128xf32>,
    return
  }
}

</mosaic_0001>

<bundles_post_ra>
// kernel: squeeze.1
= control target key start
LH: loop header
LB: loop body
LE: loop exit
PB: predicated region body
PF: predicated region fallthrough
CT: control target
= control target key end

     0   :  { %s93_s0 = inlined_call_operand.vmem [shape: f32[32], index: 0, kind: input, shape index: {}]   ;;  %s94_s1 = inlined_call_operand.hbm [shape: f32[4,8,1], index: 1, kind: output, shape index: {}]  }
   0x1   :  { %v6_v0 = vld [vmem:[%s93_s0] sm:$0x1] }
   0x2   :  { %7 = vst [vmem:[#allocation3] sm:$0x1] %v6_v0 }
   0x3   :  { %2 = vsyncpa [#allocation1], 0  ;;  %s73_s0 = smov 120   ;;  %s74_s8 = smov 104   ;;  %vm9_vm0 = vcmask 64512  }
   0x4   :  { %s75_s9 = smov 112   ;;  %s76_s10 = smov [#allocation0]  }
   0x5   :  { %s41_s11 = sshll.u32 %s76_s10, 4  ;;  %s42_s11 = int_to_ptr.vmem [resolvable:$true] %s41_s11 }
   0x6   :  { %s51_s12 = scalar_lea.vmem %s42_s11, 64  ;;  %p56_p1 = scmp.lt.s32.totalorder %s42_s11, %s42_s11 }
   0x7   :  { %p52_p0 = scmp.ne.s32.totalorder %s42_s11, %s51_s12  ;;  %p57_p2 = scmp.lt.s32.totalorder %s51_s12, %s51_s12 }
   0x9   :  { %v11_v1 = vld [vmem:[#allocation3] sm:$0x1]   ;;  %p58_p3 = por %p57_p2, %p56_p1 }
   0xa   :  { %v23_v2 = vld [vmem:[#allocation3] sm:$0x1]   ;;  %12 = vrot.lane.b32.xlu0 %v11_v1, %s73_s0 }
   0xb   :  { %24 = vrot.lane.b32.xlu1 %v23_v2, %s74_s8  ;;  %v8_v3 = vld [vmem:[#allocation3] sm:$0x1]   ;;  %p59_p4 = pnand %p58_p3, %p52_p0 }
   0xc   :  { %v17_v4 = vld [vmem:[#allocation3] sm:$0x1]   ;;  %10 = vst.msk [vmem:[#allocation2] sm:$0x1] %vm9_vm0, %v8_v3  }
   0xe   :  { %18 = vrot.lane.b32.xlu0 %v17_v4, %s75_s9 }
  0x7c   :  { %v13_v5 = vpop.permute.xlu0 %12  }
  0x7d   :  { %v25_v6 = vpop.permute.xlu1 %24   ;;  %16 = vst.msk [vmem:[#allocation2 + $0x1] sm:$0x1] %vm9_vm0, %v13_v5  }
  0x7e   :  { %28 = vst.msk [vmem:[#allocation2 + $0x3] sm:$0x1] %vm9_vm0, %v25_v6  }
  0x80   :  { %v19_v7 = vpop.permute.xlu0 %18  }
  0x81   :  { %22 = vst.msk [vmem:[#allocation2 + $0x2] sm:$0x1] %vm9_vm0, %v19_v7  }
  0x88   :  { %v33_v8 = vld [vmem:[#allocation2] sm:$0xf] }
  0x89   :  { %36 = vst [vmem:[#allocation0] sm:$0xf] %v33_v8 }
  0x8a   :  { %62 = shalt.err (!%p59_p4)
}
  0x8b   :  { %44 = dma.vmem_to_hbm [thread:$0]  %s42_s11, 64, %s94_s1, [#allocation1]  }
  0x8c   :  { %71 = dma.done.wait [#allocation1], 64  }
  0x8d   :  { %72 = vsyncadd [#allocation1], 4294967232 }
  0x8e   :  { %46 = vsyncpa [#allocation1], 1 }

// kernel: attention_critic_forward.1
= control target key start
LH: loop header
LB: loop body
LE: loop exit
PB: predicated region body
PF: predicated region fallthrough
CT: control target
= control target key end

     0   :  { %vm224_vm4 = vcmask 523264   ;;  %v2262_v43 = vmov 0.0   ;;  %v196_v44 = vlaneseq  ;;  %vm2263_vm5 = vmmov 0   ;;  %s2264_s26 = smov 64   ;;  %s2265_s27 = smov 96   ;;  %s2709_s1 = inlined_call_operand.vmem [shape: bf16[352,128], index: 1, kind: input, shape index: {}]   ;;  %s2710_s0 = inlined_call_operand.vmem [shape: f32[32,128], index: 0, kind: input, shape index: {}]   ;;  %s2711_s2 = inlined_call_operand.vmem [shape: bf16[144,256], index: 2, kind: input, shape index: {}]   ;;  %s2712_s3 = inlined_call_operand.vmem [shape: f32[32,128], index: 3, kind: output, shape index: {}]  }
   0x1   :  { %v2196_v0 = vld [vmem:[%s2709_s1 + $0x38] sm:$0xff]   ;;  %v2197_v1 = vld [vmem:[%s2709_s1 + $0x30] sm:$0xff]   ;;  %v2198_v2 = vld [vmem:[%s2709_s1 + $0x28] sm:$0xff]   ;;  %vm310_vm10 = vcmask 261120   ;;  %vm465_vm11 = vcmask 1041408   ;;  %vm461_vm12 = vcmask 31744  }
   0x2   :  { %1980 = vmatprep.subr.bf16.mxu0 %v2196_v0  ;;  %v2199_v3 = vld [vmem:[%s2709_s1 + $0x20] sm:$0xff]   ;;  %v75_v5 = vld [vmem:[%s2710_s0 + $0x8] sm:$0xff]  ;;  %v2200_v7 = vld [vmem:[%s2709_s1 + $0x18] sm:$0xff]   ;;  %v197_v45 = vshrl.u32 %v196_v44, 7  ;;  %vm1612_vm13 = vcmask 785408   ;;  %s2267_s29 = smov 1  }
   0x3   :  { %1981 = vmatpush3.bf16.msra.mxu0 %v2196_v0  ;;  %v74_v4 = vld [vmem:[%s2710_s0] sm:$0xff]  ;;  %v2204_v8 = vld [vmem:[%s2709_s1 + $0x68] sm:$0xff]   ;;  %v2201_v9 = vld [vmem:[%s2709_s1 + $0x10] sm:$0xff]  }
   0x4   :  { %1982 = vmatprep.subr.bf16.mxu0 %v2197_v1  ;;  %v78_v6 = vpack.c.bf16 %v75_v5, %v74_v4  ;;  %2000 = vmatprep.subr.bf16.mxu1 %v2204_v8  ;;  %v2202_v10 = vld [vmem:[%s2709_s1 + $0x8] sm:$0xff]   ;;  %v2203_v11 = vld [vmem:[%s2709_s1] sm:$0xff]   ;;  %v76_v12 = vld [vmem:[%s2710_s0 + $0x10] sm:$0xff]  ;;  %v198_v49 = vsub.s32 0, %v197_v45 }
   0x5   :  { %2001 = vmatpush3.bf16.msra.mxu1 %v2204_v8  ;;  %v77_v13 = vld [vmem:[%s2710_s0 + $0x18] sm:$0xff]  ;;  %v2205_v15 = vld [vmem:[%s2709_s1 + $0x60] sm:$0xff]   ;;  %v2207_v17 = vld [vmem:[%s2709_s1 + $0x50] sm:$0xff]  }
   0x6   :  { %1996 = vmatprep.mubr.bf16.mxu0 %v78_v6  ;;  %v79_v14 = vpack.c.bf16 %v77_v13, %v76_v12  ;;  %2002 = vmatprep.subr.bf16.mxu1 %v2205_v15  ;;  %v2206_v16 = vld [vmem:[%s2709_s1 + $0x58] sm:$0xff]   ;;  %v1898_v18 = vld [vmem:[%s2709_s1 + $0x40] sm:$0xff]   ;;  %v1899_v19 = vld [vmem:[%s2709_s1 + $0x48] sm:$0xff]  }
   0x7   :  { %1983 = vmatpush3.bf16.msra.mxu0 %v2197_v1  ;;  %v1876_v20 = vunpack.c.l.bf16 %v1898_v18  ;;  %v1880_v21 = vunpack.c.l.bf16 %v1899_v19  ;;  %v1881_v23 = vunpack.c.h.bf16 %v1899_v19  ;;  %v1877_v26 = vunpack.c.h.bf16 %v1898_v18  ;;  %v2359_v42 = vld [vmem:[%s2709_s1 + $0x80] sm:$0xff]   ;;  %v43_v46 = vld [vmem:[%s2709_s1 + $0x70] sm:$0x1]  ;;  %v2371_v47 = vld [vmem:[%s2709_s1 + $0x78] sm:$0xff]  }
   0x8   :  { %1984 = vmatprep.subr.bf16.mxu0 %v2198_v2  ;;  %v195_v48 = vunpack.c.l.bf16 %v43_v46 }
   0x9   :  { %2003 = vmatpush3.bf16.msra.mxu1 %v2205_v15 }
   0xa   :  { %2004 = vmatprep.subr.bf16.mxu1 %v2206_v16  ;;  %v199_v50 = vrot.slane %v195_v48, %v198_v49 }
   0xb   :  { %1985 = vmatpush3.bf16.msra.mxu0 %v2198_v2 }
   0xc   :  { %1986 = vmatprep.subr.bf16.mxu0 %v2199_v3 }
   0xd   :  { %2005 = vmatpush3.bf16.msra.mxu1 %v2206_v16 }
   0xe   :  { %2006 = vmatprep.subr.bf16.mxu1 %v2207_v17 }
   0xf   :  { %1987 = vmatpush3.bf16.msra.mxu0 %v2199_v3 }
  0x10   :  { %1988 = vmatprep.subr.bf16.mxu0 %v2200_v7 }
  0x11   :  { %2007 = vmatpush3.bf16.msra.mxu1 %v2207_v17 }
  0x12   :  { %2012 = vmatprep.subr.bf16.mxu1 %v2262_v43 }
  0x13   :  { %1989 = vmatpush3.bf16.msra.mxu0 %v2200_v7 }
  0x14   :  { %1990 = vmatprep.subr.bf16.mxu0 %v2201_v9 }
  0x17   :  { %1991 = vmatpush3.bf16.msra.mxu0 %v2201_v9 }
  0x18   :  { %1992 = vmatprep.subr.bf16.mxu0 %v2202_v10 }
  0x1b   :  { %1993 = vmatpush3.bf16.msra.mxu0 %v2202_v10  ;;  %v48_v10 = vld [vmem:[%s2709_s1 + $0x88] sm:$0x3] }
  0x1c   :  { %1994 = vmatprep.subr.bf16.mxu0 %v2203_v11 }
  0x1f   :  { %1995 = vmatpush3.bf16.msra.mxu0 %v2203_v11  ;;  %v2430_v11 = vsel %vm465_vm11, %v48_v10, 0 }
  0x20   :  { %2042 = vmatprep.subr.bf16.mxu0 %v2262_v43 }
  0x22   :  { %1997 = vmatmul.mubr.bf16.vlgmr.msra.gmra.mxu0 %v79_v14 }
  0x23   :  { %2044 = vmatprep.mubr.msk.bf16.mxu0 %vm2263_vm5, %v2262_v43  ;;  %2043 = vmatpush3.bf16.msra.mxu0 %v2430_v11 }
  0x24   :  { %2054 = vmatprep.subr.bf16.mxu0 %v2262_v43 }
  0xe2   :  { %v1998_v22 = vpop.f32.mrf.mxu0 }
  0xe3   :  { %v175_v27 = vadd.f32 %v1998_v22, %v1880_v21 }
  0xe4   :  { %v166_v24 = vpop.f32.mrf.mxu0 }
  0xe5   :  { %v167_v25 = vadd.f32 %v1876_v20, %v166_v24  ;;  %v187_v34 = vmul.f32 0.01, %v175_v27  ;;  %vm183_vm2 = vcmp.ge.f32.partialorder %v175_v27, 0.0 }
  0xe6   :  { %v1999_v28 = vpop.f32.mrf.mxu0 }
  0xe7   :  { %v178_v29 = vadd.f32 %v1999_v28, %v1881_v23  ;;  %v185_v31 = vmul.f32 0.01, %v167_v25  ;;  %vm181_vm1 = vcmp.ge.f32.partialorder %v167_v25, 0.0  ;;  %v2348_v39 = vsel %vm183_vm2, %v175_v27, %v187_v34 }
  0xe8   :  { %v169_v30 = vpop.f32.mrf.mxu0 }
  0xe9   :  { %vm184_vm0 = vcmp.ge.f32.partialorder %v178_v29, 0.0  ;;  %v188_v32 = vmul.f32 0.01, %v178_v29  ;;  %v170_v33 = vadd.f32 %v1877_v26, %v169_v30  ;;  %v2344_v37 = vsel %vm181_vm1, %v167_v25, %v185_v31 }
  0xeb   :  { %v186_v35 = vmul.f32 0.01, %v170_v33  ;;  %vm182_vm3 = vcmp.ge.f32.partialorder %v170_v33, 0.0  ;;  %v2342_v36 = vsel %vm184_vm0, %v178_v29, %v188_v32 }
  0xec   :  { %v194_v41 = vpack.c.bf16 %v2342_v36, %v2348_v39 }
  0xed   :  { %v2346_v38 = vsel %vm182_vm3, %v170_v33, %v186_v35 }
  0xee   :  { %v193_v40 = vpack.c.bf16 %v2346_v38, %v2344_v37 }
  0xf0   :  { %2008 = vmatprep.mubr.msk.bf16.mxu1 %vm224_vm4, %v193_v40 }
  0xf1   :  { %2009 = vmatmul.mubr.msk.bf16.vlgmr.msra.gmra.mxu1 %vm224_vm4, %v194_v41 }
  0xf2   :  { %2013 = vmatpush3.bf16.msra.mxu1 %v2359_v42  ;;  %2016 = vmatprep.mubr.msk.bf16.mxu1 %vm2263_vm5, %v2262_v43 }
  0xf3   :  { %2014 = vmatprep.subr.bf16.mxu1 %v2262_v43 }
  0xf6   :  { %2015 = vmatpush3.bf16.msra.mxu1 %v2371_v47 }
  0xf7   :  { %2020 = vmatprep.subr.bf16.mxu1 %v2262_v43 }
 0x1b1   :  { %v2010_v51 = vpop.f32.mrf.mxu1 }
 0x1b2   :  { %v2379_v52 = vadd.f32 %v2010_v51, %v199_v50 }
 0x1b3   :  { %v265_v53 = vpop.f32.mrf.mxu1 }
 0x1b4   :  { %v2381_v54 = vadd.f32 %v265_v53, %v199_v50  ;;  %925 = vrot.lane.b32.xlu1 %v2379_v52, %s2264_s26  ;;  %v286_v58 = vmul.f32 0.01, %v2379_v52  ;;  %vm282_vm6 = vcmp.ge.f32.partialorder %v2379_v52, 0.0 }
 0x1b5   :  { %v2011_v55 = vpop.f32.mrf.mxu1 }
 0x1b6   :  { %v2385_v56 = vadd.f32 %v2011_v55, %v199_v50  ;;  %293 = vrot.lane.b32.xlu0 %v2381_v54, %s2264_s26  ;;  %v290_v61 = vsel %vm282_vm6, %v2379_v52, %v286_v58  ;;  %v284_v0 = vmul.f32 0.01, %v2381_v54  ;;  %vm280_vm9 = vcmp.ge.f32.partialorder %v2381_v54, 0.0 }
 0x1b7   :  { %v268_v57 = vpop.f32.mrf.mxu1  ;;  %vm1800_vm6 = vcmask 7168  }
 0x1b8   :  { %v2390_v59 = vadd.f32 %v268_v57, %v199_v50  ;;  %1224 = vrot.lane.b32.xlu1 %v2385_v56, %s2264_s26  ;;  %v287_v62 = vmul.f32 0.01, %v2385_v56  ;;  %vm283_vm8 = vcmp.ge.f32.partialorder %v2385_v56, 0.0  ;;  %v288_v2 = vsel %vm280_vm9, %v2381_v54, %v284_v0 }
 0x1ba   :  { %622 = vrot.lane.b32.xlu0 %v2390_v59, %s2264_s26  ;;  %vm281_vm7 = vcmp.ge.f32.partialorder %v2390_v59, 0.0  ;;  %v285_v60 = vmul.f32 0.01, %v2390_v59  ;;  %v291_v1 = vsel %vm283_vm8, %v2385_v56, %v287_v62 }
 0x1bc   :  { %560 = vrot.lane.b32.xlu1 %v290_v61, %s2265_s27  ;;  %v289_v63 = vsel %vm281_vm7, %v2390_v59, %v285_v60  ;;  %vm1805_vm7 = vcmask 39936  }
 0x1be   :  { %510 = vrot.lane.b32.xlu0 %v289_v63, %s2265_s27 }
 0x1c0   :  { %611 = vrot.lane.b32.xlu1 %v291_v1, %s2265_s27 }
 0x1c2   :  { %821 = vrot.lane.b32.xlu0 %v288_v2, %s2265_s27 }
 0x228   :  { %v294_v3 = vpop.permute.xlu0 %293 }
 0x229   :  { %v296_v4 = vmul.f32 %v294_v3, %v2390_v59  ;;  %v354_v6 = vmul.f32 %v294_v3, %v2379_v52  ;;  %v399_v8 = vmul.f32 %v294_v3, %v2385_v56  ;;  %v2477_v3 = vpop.permute.xlu1 %925 }
 0x22b   :  { %v297_v5 = vpack.c.bf16 %v296_v4, %v296_v4  ;;  %v355_v7 = vpack.c.bf16 %v354_v6, %v354_v6  ;;  %v400_v9 = vpack.c.bf16 %v399_v8, %v399_v8 }
 0x22c   :  { %v623_v57 = vpop.permute.xlu0 %622 }
 0x22d   :  { %2017 = vmatmul.mubr.msk.bf16.vlgmr.msra.gmra.mxu1 %vm310_vm10, %v297_v5  ;;  %v625_v58 = vmul.f32 %v623_v57, %v2381_v54  ;;  %v670_v63 = vmul.f32 %v623_v57, %v2379_v52  ;;  %v715_v0 = vmul.f32 %v623_v57, %v2385_v56  ;;  %v2479_v4 = vpop.permute.xlu1 %1224 }
 0x22e   :  { %2021 = vmatpush3.bf16.msra.mxu1 %v2359_v42  ;;  %2024 = vmatprep.mubr.msk.bf16.mxu1 %vm2263_vm5, %v2262_v43 }
 0x22f   :  { %2022 = vmatprep.subr.bf16.mxu1 %v2262_v43  ;;  %v626_v61 = vpack.c.bf16 %v625_v58, %v625_v58  ;;  %v671_v1 = vpack.c.bf16 %v670_v63, %v670_v63  ;;  %v716_v2 = vpack.c.bf16 %v715_v0, %v715_v0 }
 0x230   :  { %v2483_v6 = vpop.permute.xlu0 %510 }
 0x231   :  { %v2481_v5 = vpop.permute.xlu1 %560 }
 0x232   :  { %2023 = vmatpush3.bf16.msra.mxu1 %v2371_v47 }
 0x233   :  { %2028 = vmatprep.subr.bf16.mxu1 %v2262_v43 }
 0x235   :  { %2025 = vmatmul.mubr.msk.bf16.vlgmr.msra.gmra.mxu1 %vm310_vm10, %v355_v7 }
 0x236   :  { %2029 = vmatpush3.bf16.msra.mxu1 %v2359_v42  ;;  %2032 = vmatprep.mubr.msk.bf16.mxu1 %vm2263_vm5, %v2262_v43 }
 0x237   :  { %2030 = vmatprep.subr.bf16.mxu1 %v2262_v43 }
 0x23a   :  { %2031 = vmatpush3.bf16.msra.mxu1 %v2371_v47 }
 0x23b   :  { %2036 = vmatprep.subr.bf16.mxu1 %v2262_v43 }
 0x23d   :  { %2033 = vmatmul.mubr.msk.bf16.vlgmr.msra.gmra.mxu1 %vm310_vm10, %v400_v9 }
 0x23e   :  { %2038 = vmatprep.mubr.msk.bf16.mxu1 %vm2263_vm5, %v2262_v43  ;;  %2037 = vmatpush3.bf16.msra.mxu1 %v2430_v11 }
 0x23f   :  { %2048 = vmatprep.subr.bf16.mxu1 %v2262_v43 }
 0x2ed   :  { %v348_v12 = vpop.f32.mrf.mxu1 }
 0x2ee   :  { %v616_v17 = vmul.f32 %v348_v12, %v348_v12 }
 0x2ef   :  { %v2018_v13 = vpop.f32.mrf.mxu1 }
 0x2f1   :  { %v351_v14 = vpop.f32.mrf.mxu1 }
 0x2f3   :  { %v2019_v15 = vpop.f32.mrf.mxu1 }
 0x2f5   :  { %v393_v16 = vpop.f32.mrf.mxu1 }
 0x2f6   :  { %v617_v18 = vmul.f32 %v393_v16, %v393_v16  ;;  %v444_v23 = vmax.f32 %v348_v12, %v393_v16 }
 0x2f7   :  { %v2026_v19 = vpop.f32.mrf.mxu1 }
 0x2f8   :  { %v618_v20 = vadd.f32 %v617_v18, %v616_v17  ;;  %v2487_v19 = vpop.permute.xlu1 %611 }
 0x2f9   :  { %v396_v21 = vpop.f32.mrf.mxu1 }
 0x2fb   :  { %v2027_v22 = vpop.f32.mrf.mxu1 }
 0x2fd   :  { %v438_v24 = vpop.f32.mrf.mxu1 }
 0x2fe   :  { %v445_v25 = vmax.f32 %v444_v23, %v438_v24  ;;  %v619_v26 = vmul.f32 %v438_v24, %v438_v24 }
 0x2ff   :  { %v2034_v27 = vpop.f32.mrf.mxu1 }
 0x300   :  { %v446_v28 = vsub.f32 %v348_v12, %v445_v25  ;;  %v449_v29 = vsub.f32 %v393_v16, %v445_v25  ;;  %v452_v30 = vsub.f32 %v438_v24, %v445_v25  ;;  %v2436_v31 = vadd.f32 %v619_v26, %v618_v20 }
 0x301   :  { %v441_v32 = vpop.f32.mrf.mxu1 }
 0x302   :  { %v447_v33 = vmul.f32 1.442695, %v446_v28  ;;  %v450_v34 = vmul.f32 1.442695, %v449_v29  ;;  %v453_v35 = vmul.f32 1.442695, %v452_v30 }
 0x303   :  { %v2035_v40 = vpop.f32.mrf.mxu1 }
 0x304   :  { %2230 = vpow2.f32 %v447_v33 }
 0x305   :  { %2232 = vpow2.f32 %v450_v34 }
 0x306   :  { %2234 = vpow2.f32 %v453_v35 }
 0x311   :  { %v2231_v41 = vpop.eup %2230 }
 0x312   :  { %v2233_v44 = vpop.eup %2232 }
 0x313   :  { %v455_v45 = vadd.f32 %v2233_v44, %v2231_v41  ;;  %v2235_v46 = vpop.eup %2234 }
 0x315   :  { %v456_v48 = vadd.f32 %v2235_v46, %v455_v45 }
 0x317   :  { %2236 = vrcp.f32 %v456_v48 }
 0x324   :  { %v2237_v49 = vpop.eup %2236 }
 0x325   :  { %v459_v50 = vmul.f32 %v2237_v49, %v2231_v41  ;;  %v514_v51 = vmul.f32 %v2237_v49, %v2233_v44  ;;  %v565_v60 = vmul.f32 %v2237_v49, %v2235_v46 }
 0x327   :  { %v460_v53 = vpack.c.bf16 %v459_v50, %v459_v50  ;;  %v515_v55 = vpack.c.bf16 %v514_v51, %v514_v51  ;;  %v566_v62 = vpack.c.bf16 %v565_v60, %v565_v60 }
 0x329   :  { %2039 = vmatmul.mubr.msk.bf16.vlgmr.msra.gmra.mxu1 %vm461_vm12, %v460_v53  ;;  %2045 = vmatmul.mubr.msk.bf16.vlgmr.msra.gmra.mxu0 %vm461_vm12, %v515_v55 }
 0x32a   :  { %2049 = vmatpush3.bf16.msra.mxu1 %v2430_v11  ;;  %2055 = vmatpush3.bf16.msra.mxu0 %v2359_v42 }
 0x32b   :  { %2056 = vmatprep.subr.bf16.mxu0 %v2262_v43  ;;  %2050 = vmatprep.mubr.msk.bf16.mxu1 %vm2263_vm5, %v2262_v43 }
 0x32c   :  { %2058 = vmatprep.mubr.msk.bf16.mxu0 %vm2263_vm5, %v2262_v43  ;;  %2062 = vmatprep.subr.bf16.mxu1 %v2262_v43 }
 0x32e   :  { %2057 = vmatpush3.bf16.msra.mxu0 %v2371_v47 }
 0x32f   :  { %2070 = vmatprep.subr.bf16.mxu0 %v2262_v43 }
 0x331   :  { %2051 = vmatmul.mubr.msk.bf16.vlgmr.msra.gmra.mxu1 %vm461_vm12, %v566_v62  ;;  %2059 = vmatmul.mubr.msk.bf16.vlgmr.msra.gmra.mxu0 %vm310_vm10, %v626_v61 }
 0x332   :  { %2063 = vmatpush3.bf16.msra.mxu1 %v2359_v42  ;;  %2071 = vmatpush3.bf16.msra.mxu0 %v2359_v42 }
 0x333   :  { %2064 = vmatprep.subr.bf16.mxu1 %v2262_v43  ;;  %2072 = vmatprep.subr.bf16.mxu0 %v2262_v43 }
 0x334   :  { %2066 = vmatprep.mubr.msk.bf16.mxu1 %vm2263_vm5, %v2262_v43  ;;  %2074 = vmatprep.mubr.msk.bf16.mxu0 %vm2263_vm5, %v2262_v43 }
 0x336   :  { %2065 = vmatpush3.bf16.msra.mxu1 %v2371_v47  ;;  %2073 = vmatpush3.bf16.msra.mxu0 %v2371_v47 }
 0x337   :  { %2078 = vmatprep.subr.bf16.mxu1 %v2262_v43  ;;  %2084 = vmatprep.subr.bf16.mxu0 %v2262_v43 }
 0x339   :  { %2067 = vmatmul.mubr.msk.bf16.vlgmr.msra.gmra.mxu1 %vm310_vm10, %v671_v1  ;;  %2075 = vmatmul.mubr.msk.bf16.vlgmr.msra.gmra.mxu0 %vm310_vm10, %v716_v2 }
 0x33a   :  { %2079 = vmatpush3.bf16.msra.mxu1 %v2430_v11  ;;  %2085 = vmatpush3.bf16.msra.mxu0 %v2430_v11 }
 0x33b   :  { %2080 = vmatprep.mubr.msk.bf16.mxu1 %vm2263_vm5, %v2262_v43  ;;  %2086 = vmatprep.mubr.msk.bf16.mxu0 %vm2263_vm5, %v2262_v43 }
 0x33c   :  { %2090 = vmatprep.subr.bf16.mxu1 %v2262_v43  ;;  %2096 = vmatprep.subr.bf16.mxu0 %v2262_v43 }
 0x3e9   :  { %v503_v7 = vpop.f32.mrf.mxu1  ;;  %v553_v8 = vpop.f32.mrf.mxu0 }
 0x3ea   :  { %v513_v9 = vmul.f32 %v2483_v6, %v503_v7  ;;  %v563_v10 = vmul.f32 %v2481_v5, %v553_v8 }
 0x3eb   :  { %v2040_v12 = vpop.f32.mrf.mxu1  ;;  %v2046_v13 = vpop.f32.mrf.mxu0 }
 0x3ec   :  { %v564_v14 = vadd.f32 %v563_v10, %v513_v9 }
 0x3ed   :  { %v506_v15 = vpop.f32.mrf.mxu1  ;;  %v556_v16 = vpop.f32.mrf.mxu0 }
 0x3ef   :  { %v2041_v17 = vpop.f32.mrf.mxu1  ;;  %v2047_v18 = vpop.f32.mrf.mxu0 }
 0x3f0   :  { %v973_v18 = vmul.f32 %v2477_v3, %v2390_v59 }
 0x3f1   :  { %v604_v20 = vpop.f32.mrf.mxu1  ;;  %v664_v21 = vpop.f32.mrf.mxu0 }
 0x3f2   :  { %v614_v22 = vmul.f32 %v2487_v19, %v604_v20  ;;  %v919_v33 = vmul.f32 %v664_v21, %v664_v21  ;;  %v1018_v20 = vmul.f32 %v2477_v3, %v2385_v56 }
 0x3f3   :  { %v2052_v23 = vpop.f32.mrf.mxu1  ;;  %v2060_v24 = vpop.f32.mrf.mxu0 }
 0x3f4   :  { %v2490_v25 = vadd.f32 %v614_v22, %v564_v14  ;;  %v928_v14 = vmul.f32 %v2477_v3, %v2381_v54  ;;  %v1019_v22 = vpack.c.bf16 %v1018_v20, %v1018_v20 }
 0x3f5   :  { %v607_v26 = vpop.f32.mrf.mxu1  ;;  %v667_v27 = vpop.f32.mrf.mxu0 }
 0x3f6   :  { %v929_v16 = vpack.c.bf16 %v928_v14, %v928_v14  ;;  %v2536_v26 = vpop.permute.xlu0 %821 }
 0x3f7   :  { %v2053_v28 = vpop.f32.mrf.mxu1  ;;  %v2061_v29 = vpop.f32.mrf.mxu0 }
 0x3f9   :  { %v709_v30 = vpop.f32.mrf.mxu1  ;;  %v754_v32 = vpop.f32.mrf.mxu0 }
 0x3fa   :  { %v760_v34 = vmax.f32 %v664_v21, %v709_v30  ;;  %v920_v35 = vmul.f32 %v709_v30, %v709_v30  ;;  %v922_v46 = vmul.f32 %v754_v32, %v754_v32 }
 0x3fb   :  { %v2068_v40 = vpop.f32.mrf.mxu1  ;;  %v2076_v41 = vpop.f32.mrf.mxu0 }
 0x3fc   :  { %v921_v44 = vadd.f32 %v920_v35, %v919_v33  ;;  %v761_v45 = vmax.f32 %v760_v34, %v754_v32 }
 0x3fd   :  { %v712_v48 = vpop.f32.mrf.mxu1  ;;  %v757_v49 = vpop.f32.mrf.mxu0 }
 0x3fe   :  { %v762_v50 = vsub.f32 %v664_v21, %v761_v45  ;;  %v765_v51 = vsub.f32 %v709_v30, %v761_v45  ;;  %v768_v53 = vsub.f32 %v754_v32, %v761_v45  ;;  %v2492_v55 = vadd.f32 %v922_v46, %v921_v44 }
 0x3ff   :  { %v2069_v57 = vpop.f32.mrf.mxu1  ;;  %v2077_v58 = vpop.f32.mrf.mxu0  ;;  %v974_v21 = vpack.c.bf16 %v973_v18, %v973_v18 }
 0x400   :  { %v763_v60 = vmul.f32 1.442695, %v762_v50  ;;  %v766_v61 = vmul.f32 1.442695, %v765_v51  ;;  %v769_v62 = vmul.f32 1.442695, %v768_v53 }
 0x402   :  { %2238 = vpow2.f32 %v763_v60 }
 0x403   :  { %2240 = vpow2.f32 %v766_v61 }
 0x404   :  { %2242 = vpow2.f32 %v769_v62 }
 0x40f   :  { %v2239_v63 = vpop.eup %2238 }
 0x410   :  { %v2241_v0 = vpop.eup %2240 }
 0x411   :  { %v771_v1 = vadd.f32 %v2241_v0, %v2239_v63  ;;  %v2243_v2 = vpop.eup %2242 }
 0x413   :  { %v772_v7 = vadd.f32 %v2243_v2, %v771_v1 }
 0x415   :  { %2244 = vrcp.f32 %v772_v7 }
 0x422   :  { %v2245_v8 = vpop.eup %2244 }
 0x423   :  { %v775_v9 = vmul.f32 %v2245_v8, %v2239_v63  ;;  %v825_v10 = vmul.f32 %v2245_v8, %v2241_v0  ;;  %v872_v15 = vmul.f32 %v2245_v8, %v2243_v2 }
 0x425   :  { %v776_v12 = vpack.c.bf16 %v775_v9, %v775_v9  ;;  %v826_v13 = vpack.c.bf16 %v825_v10, %v825_v10  ;;  %v873_v17 = vpack.c.bf16 %v872_v15, %v872_v15 }
 0x427   :  { %2081 = vmatmul.mubr.msk.bf16.vlgmr.msra.gmra.mxu1 %vm461_vm12, %v776_v12  ;;  %2087 = vmatmul.mubr.msk.bf16.vlgmr.msra.gmra.mxu0 %vm461_vm12, %v826_v13 }
 0x428   :  { %2091 = vmatpush3.bf16.msra.mxu1 %v2430_v11  ;;  %2097 = vmatpush3.bf16.msra.mxu0 %v2359_v42 }
 0x429   :  { %2098 = vmatprep.subr.bf16.mxu0 %v2262_v43  ;;  %2092 = vmatprep.mubr.msk.bf16.mxu1 %vm2263_vm5, %v2262_v43 }
 0x42a   :  { %2100 = vmatprep.mubr.msk.bf16.mxu0 %vm2263_vm5, %v2262_v43  ;;  %2104 = vmatprep.subr.bf16.mxu1 %v2262_v43 }
 0x42c   :  { %2099 = vmatpush3.bf16.msra.mxu0 %v2371_v47 }
 0x42d   :  { %2112 = vmatprep.subr.bf16.mxu0 %v2262_v43 }
 0x42f   :  { %2093 = vmatmul.mubr.msk.bf16.vlgmr.msra.gmra.mxu1 %vm461_vm12, %v873_v17  ;;  %2101 = vmatmul.mubr.msk.bf16.vlgmr.msra.gmra.mxu0 %vm310_vm10, %v929_v16 }
 0x430   :  { %2105 = vmatpush3.bf16.msra.mxu1 %v2359_v42  ;;  %2113 = vmatpush3.bf16.msra.mxu0 %v2359_v42 }
 0x431   :  { %2106 = vmatprep.subr.bf16.mxu1 %v2262_v43  ;;  %2114 = vmatprep.subr.bf16.mxu0 %v2262_v43 }
 0x432   :  { %2108 = vmatprep.mubr.msk.bf16.mxu1 %vm2263_vm5, %v2262_v43  ;;  %2116 = vmatprep.mubr.msk.bf16.mxu0 %vm2263_vm5, %v2262_v43 }
 0x434   :  { %2107 = vmatpush3.bf16.msra.mxu1 %v2371_v47  ;;  %2115 = vmatpush3.bf16.msra.mxu0 %v2371_v47 }
 0x435   :  { %2120 = vmatprep.subr.bf16.mxu1 %v2262_v43  ;;  %2126 = vmatprep.subr.bf16.mxu0 %v2262_v43 }
 0x437   :  { %2109 = vmatmul.mubr.msk.bf16.vlgmr.msra.gmra.mxu1 %vm310_vm10, %v974_v21  ;;  %2117 = vmatmul.mubr.msk.bf16.vlgmr.msra.gmra.mxu0 %vm310_vm10, %v1019_v22 }
 0x438   :  { %2121 = vmatpush3.bf16.msra.mxu1 %v2430_v11  ;;  %2127 = vmatpush3.bf16.msra.mxu0 %v2430_v11 }
 0x439   :  { %2122 = vmatprep.mubr.msk.bf16.mxu1 %vm2263_vm5, %v2262_v43  ;;  %2128 = vmatprep.mubr.msk.bf16.mxu0 %vm2263_vm5, %v2262_v43 }
 0x43a   :  { %2132 = vmatprep.subr.bf16.mxu1 %v2262_v43  ;;  %2138 = vmatprep.subr.bf16.mxu0 %v2262_v43 }
 0x4e7   :  { %v814_v56 = vpop.f32.mrf.mxu1  ;;  %v864_v3 = vpop.f32.mrf.mxu0 }
 0x4e8   :  { %v824_v29 = vmul.f32 %v2536_v26, %v814_v56  ;;  %v870_v30 = vmul.f32 %v864_v3, %v2481_v5 }
 0x4e9   :  { %v2082_v23 = vpop.f32.mrf.mxu1  ;;  %v2088_v24 = vpop.f32.mrf.mxu0 }
 0x4ea   :  { %v871_v40 = vadd.f32 %v870_v30, %v824_v29  ;;  %v1227_v30 = vmul.f32 %v2479_v4, %v2381_v54  ;;  %v1272_v54 = vmul.f32 %v2479_v4, %v2390_v59 }
 0x4eb   :  { %v817_v27 = vpop.f32.mrf.mxu1  ;;  %v867_v28 = vpop.f32.mrf.mxu0 }
 0x4ed   :  { %v2083_v32 = vpop.f32.mrf.mxu1  ;;  %v2089_v33 = vpop.f32.mrf.mxu0 }
 0x4ee   :  { %v1228_v33 = vpack.c.bf16 %v1227_v30, %v1227_v30 }
 0x4ef   :  { %v911_v34 = vpop.f32.mrf.mxu1  ;;  %v967_v35 = vpop.f32.mrf.mxu0 }
 0x4f0   :  { %v917_v41 = vmul.f32 %v911_v34, %v2487_v19  ;;  %v1218_v60 = vmul.f32 %v967_v35, %v967_v35 }
 0x4f1   :  { %v2094_v44 = vpop.f32.mrf.mxu1  ;;  %v2102_v45 = vpop.f32.mrf.mxu0 }
 0x4f2   :  { %v918_v46 = vadd.f32 %v917_v41, %v871_v40 }
 0x4f3   :  { %v914_v48 = vpop.f32.mrf.mxu1  ;;  %v970_v49 = vpop.f32.mrf.mxu0 }
 0x4f4   :  { %v2186_v50 = vpack.i.bf16 %v918_v46, %v2490_v25 }
 0x4f5   :  { %v2095_v51 = vpop.f32.mrf.mxu1  ;;  %v2103_v53 = vpop.f32.mrf.mxu0 }
 0x4f6   :  { %2187 = vrot.lane.b32.xlu0 %v2186_v50, %s2264_s26 }
 0x4f7   :  { %v1012_v57 = vpop.f32.mrf.mxu1  ;;  %v1057_v58 = vpop.f32.mrf.mxu0 }
 0x4f8   :  { %v1063_v61 = vmax.f32 %v967_v35, %v1012_v57  ;;  %v1219_v62 = vmul.f32 %v1012_v57, %v1012_v57  ;;  %v1221_v7 = vmul.f32 %v1057_v58, %v1057_v58 }
 0x4f9   :  { %v2110_v63 = vpop.f32.mrf.mxu1  ;;  %v2118_v0 = vpop.f32.mrf.mxu0 }
 0x4fa   :  { %v1220_v1 = vadd.f32 %v1219_v62, %v1218_v60  ;;  %v1064_v2 = vmax.f32 %v1063_v61, %v1057_v58 }
 0x4fb   :  { %v1015_v8 = vpop.f32.mrf.mxu1  ;;  %v1060_v9 = vpop.f32.mrf.mxu0 }
 0x4fc   :  { %v1065_v10 = vsub.f32 %v967_v35, %v1064_v2  ;;  %v1068_v12 = vsub.f32 %v1012_v57, %v1064_v2  ;;  %v1071_v13 = vsub.f32 %v1057_v58, %v1064_v2  ;;  %v2543_v25 = vadd.f32 %v1221_v7, %v1220_v1 }
 0x4fd   :  { %v2111_v14 = vpop.f32.mrf.mxu1  ;;  %v2119_v15 = vpop.f32.mrf.mxu0  ;;  %v1317_v35 = vmul.f32 %v2479_v4, %v2379_v52 }
 0x4fe   :  { %v1066_v16 = vmul.f32 1.442695, %v1065_v10  ;;  %v1069_v17 = vmul.f32 1.442695, %v1068_v12  ;;  %v1072_v18 = vmul.f32 1.442695, %v1071_v13 }
 0x4ff   :  { %v1318_v40 = vpack.c.bf16 %v1317_v35, %v1317_v35 }
 0x500   :  { %2246 = vpow2.f32 %v1066_v16 }
 0x501   :  { %2248 = vpow2.f32 %v1069_v17 }
 0x502   :  { %2250 = vpow2.f32 %v1072_v18 }
 0x50d   :  { %v2247_v20 = vpop.eup %2246 }
 0x50e   :  { %v2249_v21 = vpop.eup %2248 }
 0x50f   :  { %v1074_v22 = vadd.f32 %v2249_v21, %v2247_v20  ;;  %v2251_v56 = vpop.eup %2250 }
 0x511   :  { %v1075_v3 = vadd.f32 %v2251_v56, %v1074_v22 }
 0x513   :  { %2252 = vrcp.f32 %v1075_v3 }
 0x520   :  { %v2253_v23 = vpop.eup %2252 }
 0x521   :  { %v1078_v24 = vmul.f32 %v2253_v23, %v2247_v20  ;;  %v1124_v27 = vmul.f32 %v2253_v23, %v2249_v21  ;;  %v1171_v32 = vmul.f32 %v2253_v23, %v2251_v56 }
 0x523   :  { %v1079_v28 = vpack.c.bf16 %v1078_v24, %v1078_v24  ;;  %v1125_v29 = vpack.c.bf16 %v1124_v27, %v1124_v27  ;;  %v1172_v34 = vpack.c.bf16 %v1171_v32, %v1171_v32 }
 0x525   :  { %2123 = vmatmul.mubr.msk.bf16.vlgmr.msra.gmra.mxu1 %vm461_vm12, %v1079_v28  ;;  %2129 = vmatmul.mubr.msk.bf16.vlgmr.msra.gmra.mxu0 %vm461_vm12, %v1125_v29 }
 0x526   :  { %2133 = vmatpush3.bf16.msra.mxu1 %v2430_v11  ;;  %2139 = vmatpush3.bf16.msra.mxu0 %v2359_v42 }
 0x527   :  { %2140 = vmatprep.subr.bf16.mxu0 %v2262_v43  ;;  %2134 = vmatprep.mubr.msk.bf16.mxu1 %vm2263_vm5, %v2262_v43 }
 0x528   :  { %2142 = vmatprep.mubr.msk.bf16.mxu0 %vm2263_vm5, %v2262_v43  ;;  %2146 = vmatprep.subr.bf16.mxu1 %v2262_v43 }
 0x52a   :  { %2141 = vmatpush3.bf16.msra.mxu0 %v2371_v47 }
 0x52b   :  { %2154 = vmatprep.subr.bf16.mxu0 %v2262_v43 }
 0x52d   :  { %2135 = vmatmul.mubr.msk.bf16.vlgmr.msra.gmra.mxu1 %vm461_vm12, %v1172_v34  ;;  %2143 = vmatmul.mubr.msk.bf16.vlgmr.msra.gmra.mxu0 %vm310_vm10, %v1228_v33 }
 0x52e   :  { %2147 = vmatpush3.bf16.msra.mxu1 %v2359_v42  ;;  %2155 = vmatpush3.bf16.msra.mxu0 %v2359_v42  ;;  %v1273_v42 = vpack.c.bf16 %v1272_v54, %v1272_v54 }
 0x52f   :  { %2148 = vmatprep.subr.bf16.mxu1 %v2262_v43  ;;  %2156 = vmatprep.subr.bf16.mxu0 %v2262_v43 }
 0x530   :  { %2150 = vmatprep.mubr.msk.bf16.mxu1 %vm2263_vm5, %v2262_v43  ;;  %2158 = vmatprep.mubr.msk.bf16.mxu0 %vm2263_vm5, %v2262_v43 }
 0x532   :  { %2149 = vmatpush3.bf16.msra.mxu1 %v2371_v47  ;;  %2157 = vmatpush3.bf16.msra.mxu0 %v2371_v47  ;;  %v2212_v47 = vld [vmem:[%s2711_s2 + $0x54] ss:$8 sps:$4 sm:$0xff]  }
 0x533   :  { %2162 = vmatprep.subr.bf16.mxu1 %v2262_v43  ;;  %2168 = vmatprep.subr.bf16.mxu0 %v2262_v43 }
 0x535   :  { %2151 = vmatmul.mubr.msk.bf16.vlgmr.msra.gmra.mxu1 %vm310_vm10, %v1273_v42  ;;  %2159 = vmatmul.mubr.msk.bf16.vlgmr.msra.gmra.mxu0 %vm310_vm10, %v1318_v40  ;;  %v2210_v40 = vld [vmem:[%s2711_s2 + $0x50] ss:$8 sps:$4 sm:$0xff]  }
 0x536   :  { %2163 = vmatpush3.bf16.msra.mxu1 %v2430_v11  ;;  %2169 = vmatpush3.bf16.msra.mxu0 %v2430_v11 }
 0x537   :  { %2164 = vmatprep.mubr.msk.bf16.mxu1 %vm2263_vm5, %v2262_v43  ;;  %2170 = vmatprep.mubr.msk.bf16.mxu0 %vm2263_vm5, %v2262_v43 }
 0x538   :  { %2174 = vmatprep.subr.bf16.mxu1 %v2262_v43  ;;  %1623 = vmatprep.subr.bf16.mxu0 %v2212_v47 }
 0x5e5   :  { %v1117_v52 = vpop.f32.mrf.mxu1  ;;  %v1163_v59 = vpop.f32.mrf.mxu0 }
 0x5e6   :  { %v1123_v4 = vmul.f32 %v1117_v52, %v2536_v26  ;;  %v1169_v41 = vmul.f32 %v1163_v59, %v2483_v6  ;;  %v2215_v59 = vld [vmem:[%s2711_s2 + $0x44] ss:$8 sps:$4 sm:$0xff]  }
 0x5e7   :  { %v2124_v44 = vpop.f32.mrf.mxu1  ;;  %v2130_v45 = vpop.f32.mrf.mxu0 }
 0x5e8   :  { %v1170_v46 = vadd.f32 %v1169_v41, %v1123_v4  ;;  %v2213_v4 = vld [vmem:[%s2711_s2 + $0x40] ss:$8 sps:$4 sm:$0xff]   ;;  %v2218_v41 = vld [vmem:[%s2711_s2 + $0x34] ss:$8 sps:$4 sm:$0xff]   ;;  %v2266_v45 = vmov 0  }
 0x5e9   :  { %v1120_v48 = vpop.f32.mrf.mxu1  ;;  %v1166_v49 = vpop.f32.mrf.mxu0 }
 0x5ea   :  { %v2221_v48 = vld [vmem:[%s2711_s2 + $0x24] ss:$8 sps:$4 sm:$0xff]   ;;  %v2224_v49 = vld [vmem:[%s2711_s2 + $0x14] ss:$8 sps:$4 sm:$0xff]  }
 0x5eb   :  { %v2125_v50 = vpop.f32.mrf.mxu1  ;;  %v2131_v51 = vpop.f32.mrf.mxu0 }
 0x5ec   :  { %v2188_v50 = vpop.permute.xlu0 %2187  ;;  %v2222_v51 = vld [vmem:[%s2711_s2 + $0x10] ss:$8 sps:$4 sm:$0xff]  }
 0x5ed   :  { %v1210_v53 = vpop.f32.mrf.mxu1  ;;  %v1266_v57 = vpop.f32.mrf.mxu0 }
 0x5ee   :  { %v1216_v58 = vmul.f32 %v1210_v53, %v2487_v19  ;;  %v1517_v9 = vmul.f32 %v1266_v57, %v1266_v57  ;;  %v2227_v53 = vld [vmem:[%s2711_s2 + $0x4] ss:$8 sps:$4 sm:$0xff]  }
 0x5ef   :  { %v2136_v60 = vpop.f32.mrf.mxu1  ;;  %v2144_v61 = vpop.f32.mrf.mxu0 }
 0x5f0   :  { %v2592_v62 = vadd.f32 %v1216_v58, %v1170_v46  ;;  %v2189_v58 = vunpack.i.l.bf16 %v2188_v50  ;;  %v2225_v60 = vld [vmem:[%s2711_s2] ss:$8 sps:$4 sm:$0xff]  }
 0x5f1   :  { %v1213_v63 = vpop.f32.mrf.mxu1  ;;  %v1269_v0 = vpop.f32.mrf.mxu0 }
 0x5f2   :  { %v1538_v63 = vsel %vm224_vm4, %v2344_v37, %v2189_v58 }
 0x5f3   :  { %v2137_v1 = vpop.f32.mrf.mxu1  ;;  %v2145_v2 = vpop.f32.mrf.mxu0 }
 0x5f4   :  { %v73_v1 = vld [vmem:[%s2711_s2 + $0x80] sm:$0x33] }
 0x5f5   :  { %v1311_v7 = vpop.f32.mrf.mxu1  ;;  %v1356_v8 = vpop.f32.mrf.mxu0  ;;  %v1873_v2 = vcombine.high %v73_v1, %v73_v1 }
 0x5f6   :  { %v1362_v10 = vmax.f32 %v1266_v57, %v1311_v7  ;;  %v1518_v12 = vmul.f32 %v1311_v7, %v1311_v7  ;;  %v1520_v17 = vmul.f32 %v1356_v8, %v1356_v8 }
 0x5f7   :  { %v2152_v13 = vpop.f32.mrf.mxu1  ;;  %v2160_v14 = vpop.f32.mrf.mxu0 }
 0x5f8   :  { %v1519_v15 = vadd.f32 %v1518_v12, %v1517_v9  ;;  %v1363_v16 = vmax.f32 %v1362_v10, %v1356_v8 }
 0x5f9   :  { %v1314_v18 = vpop.f32.mrf.mxu1  ;;  %v1359_v19 = vpop.f32.mrf.mxu0 }
 0x5fa   :  { %v1364_v20 = vsub.f32 %v1266_v57, %v1363_v16  ;;  %v1367_v21 = vsub.f32 %v1311_v7, %v1363_v16  ;;  %v1370_v22 = vsub.f32 %v1356_v8, %v1363_v16  ;;  %v2594_v56 = vadd.f32 %v1520_v17, %v1519_v15 }
 0x5fb   :  { %v2153_v3 = vpop.f32.mrf.mxu1  ;;  %v2161_v23 = vpop.f32.mrf.mxu0  ;;  %v2190_v57 = vunpack.i.h.bf16 %v2188_v50  ;;  %v1872_v7 = vcombine.low %v73_v1, %v73_v1 }
 0x5fc   :  { %v1365_v24 = vmul.f32 1.442695, %v1364_v20  ;;  %v1368_v27 = vmul.f32 1.442695, %v1367_v21  ;;  %v1371_v28 = vmul.f32 1.442695, %v1370_v22 }
 0x5fd   :  { %v1539_v61 = vsel %vm224_vm4, %v2346_v38, %v2190_v57 }
 0x5fe   :  { %2254 = vpow2.f32 %v1365_v24  ;;  %v1542_v0 = vpack.c.bf16 %v1539_v61, %v1538_v63 }
 0x5ff   :  { %2256 = vpow2.f32 %v1368_v27 }
 0x600   :  { %2258 = vpow2.f32 %v1371_v28 }
 0x60b   :  { %v2255_v29 = vpop.eup %2254 }
 0x60c   :  { %v2257_v30 = vpop.eup %2256 }
 0x60d   :  { %v1373_v32 = vadd.f32 %v2257_v30, %v2255_v29  ;;  %v2259_v33 = vpop.eup %2258 }
 0x60f   :  { %v1374_v34 = vadd.f32 %v2259_v33, %v1373_v32 }
 0x611   :  { %2260 = vrcp.f32 %v1374_v34 }
 0x61e   :  { %v2261_v54 = vpop.eup %2260 }
 0x61f   :  { %v1377_v35 = vmul.f32 %v2261_v54, %v2255_v29  ;;  %v1423_v42 = vmul.f32 %v2261_v54, %v2257_v30  ;;  %v1470_v44 = vmul.f32 %v2261_v54, %v2259_v33 }
 0x621   :  { %v1378_v47 = vpack.c.bf16 %v1377_v35, %v1377_v35  ;;  %v1424_v52 = vpack.c.bf16 %v1423_v42, %v1423_v42  ;;  %v1471_v46 = vpack.c.bf16 %v1470_v44, %v1470_v44 }
 0x623   :  { %2165 = vmatmul.mubr.msk.bf16.vlgmr.msra.gmra.mxu1 %vm461_vm12, %v1378_v47  ;;  %2171 = vmatmul.mubr.msk.bf16.vlgmr.msra.gmra.mxu0 %vm461_vm12, %v1424_v52 }
 0x624   :  { %2175 = vmatpush3.bf16.msra.mxu1 %v2430_v11  ;;  %1624 = vmatpush1.bf16.msra.mxu0 %v2210_v40  ;;  %v2216_v11 = vld [vmem:[%s2711_s2 + $0x30] ss:$8 sps:$4 sm:$0xff]  }
 0x625   :  { %1625 = vmatprep.subr.bf16.mxu0 %v2215_v59  ;;  %2176 = vmatprep.mubr.msk.bf16.mxu1 %vm2263_vm5, %v2262_v43  ;;  %v2219_v43 = vld [vmem:[%s2711_s2 + $0x20] ss:$8 sps:$4 sm:$0xff]  }
 0x626   :  { %1651 = vmatprep.mubr.bf16.mxu0 %v2266_v45  ;;  %1721 = vmatprep.subr.bf16.mxu1 %v1873_v2  ;;  %v71_v2 = vld [vmem:[%s2711_s2 + $0x70] sm:$0xff] }
 0x628   :  { %1626 = vmatpush1.bf16.msra.mxu0 %v2213_v4 }
 0x629   :  { %1627 = vmatprep.subr.bf16.mxu0 %v2218_v41 }
 0x62b   :  { %2177 = vmatmul.mubr.msk.bf16.vlgmr.msra.gmra.mxu1 %vm461_vm12, %v1471_v46 }
 0x62c   :  { %1628 = vmatpush1.bf16.msra.mxu0 %v2216_v11  ;;  %1722 = vmatpush1.bf16.xpose.msra.mxu1 %v1872_v7  ;;  %v72_v7 = vld [vmem:[%s2711_s2 + $0x78] sm:$0xff] }
 0x62d   :  { %1629 = vmatprep.subr.bf16.mxu0 %v2221_v48 }
 0x630   :  { %1630 = vmatpush1.bf16.msra.mxu0 %v2219_v43 }
 0x631   :  { %1631 = vmatprep.subr.bf16.mxu0 %v2224_v49 }
 0x634   :  { %1632 = vmatpush1.bf16.msra.mxu0 %v2222_v51  ;;  %v1900_v51 = vld [vmem:[%s2709_s1 + $0x90] sm:$0xff]  }
 0x635   :  { %1633 = vmatprep.subr.bf16.mxu0 %v2227_v53  ;;  %v1884_v53 = vunpack.c.l.bf16 %v1900_v51 }
 0x638   :  { %1634 = vmatpush1.bf16.msra.mxu0 %v2225_v60  ;;  %v1885_v60 = vunpack.c.h.bf16 %v1900_v51 }
 0x63b   :  { %1870 = vmatmul.mubr.msk.bf16.vlgmr.msra.gmra.mxu0 %vm1612_vm13, %v1542_v0 }
 0x63c   :  { %1661 = vmatprep.mubr.bf16.mxu0 %v2266_v45 }
 0x6e3   :  { %v1416_v8 = vpop.f32.mrf.mxu1  ;;  %v1462_v9 = vpop.f32.mrf.mxu0 }
 0x6e4   :  { %v1422_v13 = vmul.f32 %v1416_v8, %v2536_v26  ;;  %v1468_v14 = vmul.f32 %v1462_v9, %v2483_v6  ;;  %v69_v6 = vld [vmem:[%s2711_s2 + $0x60] sm:$0xff]  ;;  %v1549_v8 = vunpack.c.h.bf16 %v71_v2  ;;  %v1548_v9 = vunpack.c.l.bf16 %v71_v2 }
 0x6e5   :  { %v2166_v38 = vpop.f32.mrf.mxu1  ;;  %v2172_v10 = vpop.f32.mrf.mxu0  ;;  %v1545_v26 = vunpack.c.h.bf16 %v69_v6  ;;  %v1544_v24 = vunpack.c.l.bf16 %v69_v6 }
 0x6e6   :  { %v1469_v18 = vadd.f32 %v1468_v14, %v1422_v13  ;;  %v1550_v10 = vunpack.c.l.bf16 %v72_v7  ;;  %v1551_v13 = vunpack.c.h.bf16 %v72_v7 }
 0x6e7   :  { %v1419_v12 = vpop.f32.mrf.mxu1  ;;  %v1465_v37 = vpop.f32.mrf.mxu0 }
 0x6e9   :  { %v2167_v15 = vpop.f32.mrf.mxu1  ;;  %v2173_v16 = vpop.f32.mrf.mxu0 }
 0x6eb   :  { %v1509_v17 = vpop.f32.mrf.mxu1 }
 0x6ec   :  { %v1515_v19 = vmul.f32 %v1509_v17, %v2481_v5  ;;  %v70_v5 = vld [vmem:[%s2711_s2 + $0x68] sm:$0xff] }
 0x6ed   :  { %v2178_v20 = vpop.f32.mrf.mxu1  ;;  %v1546_v28 = vunpack.c.l.bf16 %v70_v5  ;;  %v1547_v30 = vunpack.c.h.bf16 %v70_v5 }
 0x6ee   :  { %v1516_v21 = vadd.f32 %v1515_v19, %v1469_v18 }
 0x6ef   :  { %v1512_v22 = vpop.f32.mrf.mxu1 }
 0x6f0   :  { %v2191_v3 = vpack.i.bf16 %v1516_v21, %v2592_v62 }
 0x6f1   :  { %v2179_v23 = vpop.f32.mrf.mxu1 }
 0x6f2   :  { %2192 = vrot.lane.b32.xlu1 %v2191_v3, %s2264_s26 }
 0x6f6   :  { %1788 = vrot.lane.b32.xlu1 %v2436_v31, %s2267_s29 }
 0x6fb   :  { %v1653_v27 = vpop.f32.mrf.mxu0 }
 0x6fc   :  { %v1654_v32 = vadd.f32 %v1653_v27, %v1544_v24 }
 0x6fd   :  { %v1655_v62 = vpop.f32.mrf.mxu0 }
 0x6fe   :  { %v1656_v29 = vadd.f32 %v1655_v62, %v1545_v26  ;;  %v1680_v40 = vmul.f32 0.01, %v1654_v32  ;;  %vm1672_vm0 = vcmp.ge.f32.partialorder %v1654_v32, 0.0  ;;  %v1902_v26 = vld [vmem:[%s2709_s1 + $0xa0] sm:$0xff]  }
 0x6ff   :  { %v1657_v33 = vpop.f32.mrf.mxu0  ;;  %v1892_v24 = vunpack.c.l.bf16 %v1902_v26 }
 0x700   :  { %v1658_v34 = vadd.f32 %v1657_v33, %v1546_v28  ;;  %v1681_v31 = vmul.f32 0.01, %v1656_v29  ;;  %vm1673_vm15 = vcmp.ge.f32.partialorder %v1656_v29, 0.0  ;;  %v1688_v41 = vsel %vm1672_vm0, %v1654_v32, %v1680_v40  ;;  %v1901_v32 = vld [vmem:[%s2709_s1 + $0x98] sm:$0xff]  }
 0x701   :  { %v1659_v54 = vpop.f32.mrf.mxu0  ;;  %v1888_v33 = vunpack.c.l.bf16 %v1901_v32 }
 0x702   :  { %vm1674_vm14 = vcmp.ge.f32.partialorder %v1658_v34, 0.0  ;;  %v1682_v35 = vmul.f32 0.01, %v1658_v34  ;;  %v1660_v42 = vadd.f32 %v1659_v54, %v1547_v30  ;;  %v1689_v59 = vsel %vm1673_vm15, %v1656_v29, %v1681_v31 }
 0x703   :  { %v1889_v31 = vunpack.c.h.bf16 %v1901_v32 }
 0x704   :  { %vm1675_vm1 = vcmp.ge.f32.partialorder %v1660_v42, 0.0  ;;  %v1683_v47 = vmul.f32 0.01, %v1660_v42  ;;  %v1690_v52 = vsel %vm1674_vm14, %v1658_v34, %v1682_v35 }
 0x705   :  { %v1696_v45 = vpack.c.bf16 %v1690_v52, %v1688_v41  ;;  %v1903_v41 = vld [vmem:[%s2709_s1 + $0xa8] sm:$0xff]  }
 0x706   :  { %v1691_v4 = vsel %vm1675_vm1, %v1660_v42, %v1683_v47 }
 0x707   :  { %v1697_v44 = vpack.c.bf16 %v1691_v4, %v1689_v59 }
 0x709   :  { %1739 = vmatprep.mubr.bf16.mxu1 %v1697_v44  ;;  %v1896_v44 = vunpack.c.l.bf16 %v1903_v41 }
 0x70a   :  { %1740 = vmatmul.mubr.bf16.vlgmr.msra.gmra.mxu1 %v1696_v45 }
 0x764   :  { %v2193_v11 = vpop.permute.xlu1 %2192 }
 0x765   :  { %v2195_v46 = vunpack.i.h.bf16 %v2193_v11  ;;  %v2194_v48 = vunpack.i.l.bf16 %v2193_v11 }
 0x767   :  { %v1541_v43 = vsel %vm224_vm4, %v2342_v36, %v2195_v46  ;;  %v1540_v49 = vsel %vm224_vm4, %v2348_v39, %v2194_v48  ;;  %v1897_v48 = vunpack.c.h.bf16 %v1903_v41 }
 0x768   :  { %v1543_v50 = vpack.c.bf16 %v1541_v43, %v1540_v49  ;;  %v1789_v62 = vpop.permute.xlu1 %1788  ;;  %v1893_v43 = vunpack.c.h.bf16 %v1902_v26 }
 0x76a   :  { %1871 = vmatmul.mubr.msk.bf16.gmra.mxu0 %vm1612_vm13, %v1543_v50 }
 0x7ca   :  { %v1741_v57 = vpop.f32.mrf.mxu1 }
 0x7cb   :  { %v1760_v58 = vmul.f32 %v1884_v53, %v1741_v57 }
 0x7cc   :  { %v1743_v61 = vpop.f32.mrf.mxu1 }
 0x7cd   :  { %v1764_v63 = vsel %vm461_vm12, %v1760_v58, 0.0 }
 0x7ce   :  { %1765 = vadd.xlane.f32.xlu0 %v1764_v63  ;;  %v1744_v0 = vpop.f32.mrf.mxu1 }
 0x7cf   :  { %v1761_v36 = vmul.f32 %v1885_v60, %v1744_v0 }
 0x7d0   :  { %v1746_v1 = vpop.f32.mrf.mxu1 }
 0x7d1   :  { %v1767_v39 = vsel %vm461_vm12, %v1761_v36, 0.0 }
 0x7d2   :  { %1768 = vadd.xlane.f32.xlu1 %v1767_v39 }
 0x7e3   :  { %1792 = vrot.lane.b32.xlu1 %v2543_v25, %s2267_s29 }
 0x7e7   :  { %1794 = vrot.lane.b32.xlu1 %v2594_v56, %s2267_s29 }
 0x82a   :  { %v1663_v38 = vpop.f32.mrf.mxu0 }
 0x82b   :  { %v1664_v14 = vadd.f32 %v1663_v38, %v1548_v9 }
 0x82c   :  { %v1665_v12 = vpop.f32.mrf.mxu0 }
 0x82d   :  { %v1666_v37 = vadd.f32 %v1665_v12, %v1549_v8  ;;  %v1684_v19 = vmul.f32 0.01, %v1664_v14  ;;  %vm1676_vm4 = vcmp.ge.f32.partialorder %v1664_v14, 0.0 }
 0x82e   :  { %v1667_v25 = vpop.f32.mrf.mxu0 }
 0x82f   :  { %v1668_v15 = vadd.f32 %v1667_v25, %v1550_v10  ;;  %v1685_v56 = vmul.f32 0.01, %v1666_v37  ;;  %vm1677_vm3 = vcmp.ge.f32.partialorder %v1666_v37, 0.0  ;;  %v1692_v6 = vsel %vm1676_vm4, %v1664_v14, %v1684_v19 }
 0x830   :  { %v1669_v16 = vpop.f32.mrf.mxu0 }
 0x831   :  { %vm1678_vm2 = vcmp.ge.f32.partialorder %v1668_v15, 0.0  ;;  %v1686_v17 = vmul.f32 0.01, %v1668_v15  ;;  %v1670_v18 = vadd.f32 %v1669_v16, %v1551_v13  ;;  %v1693_v22 = vsel %vm1677_vm3, %v1666_v37, %v1685_v56 }
 0x833   :  { %vm1679_vm5 = vcmp.ge.f32.partialorder %v1670_v18, 0.0  ;;  %v1687_v20 = vmul.f32 0.01, %v1670_v18  ;;  %v1694_v21 = vsel %vm1678_vm2, %v1668_v15, %v1686_v17 }
 0x834   :  { %v1698_v5 = vpack.c.bf16 %v1694_v21, %v1692_v6 }
 0x835   :  { %v1695_v3 = vsel %vm1679_vm5, %v1670_v18, %v1687_v20 }
 0x836   :  { %v1699_v23 = vpack.c.bf16 %v1695_v3, %v1693_v22 }
 0x838   :  { %1747 = vmatprep.mubr.bf16.mxu1 %v1699_v23 }
 0x839   :  { %1748 = vmatmul.mubr.bf16.gmra.mxu1 %v1698_v5 }
 0x857   :  { %v1766_v27 = vpop.xlane.xlu0 %1765 }
 0x858   :  { %v1780_v28 = vadd.f32 %v1892_v24, %v1766_v27 }
 0x85a   :  { %v1801_v29 = vsel %vm1800_vm6, %v1780_v28, %v1789_v62 }
 0x85b   :  { %v1806_v30 = vsel %vm1805_vm7, %v1801_v29, 0.0  ;;  %v1769_v4 = vpop.xlane.xlu1 %1768 }
 0x85c   :  { %1810 = vst [vmem:[%s2712_s3] sm:$0xff] %v1806_v30  ;;  %v1781_v57 = vadd.f32 %v1893_v43, %v1769_v4 }
 0x85f   :  { %v1793_v45 = vpop.permute.xlu1 %1792 }
 0x863   :  { %v1795_v53 = vpop.permute.xlu1 %1794 }
 0x8f9   :  { %v1749_v34 = vpop.f32.mrf.mxu1 }
 0x8fa   :  { %v1762_v54 = vmul.f32 %v1888_v33, %v1749_v34 }
 0x8fb   :  { %v1751_v35 = vpop.f32.mrf.mxu1 }
 0x8fc   :  { %v1770_v42 = vsel %vm461_vm12, %v1762_v54, 0.0 }
 0x8fd   :  { %1771 = vadd.xlane.f32.xlu0 %v1770_v42  ;;  %v1752_v40 = vpop.f32.mrf.mxu1 }
 0x8fe   :  { %v1763_v47 = vmul.f32 %v1889_v31, %v1752_v40 }
 0x8ff   :  { %v1754_v52 = vpop.f32.mrf.mxu1 }
 0x900   :  { %v1773_v59 = vsel %vm461_vm12, %v1763_v47, 0.0 }
 0x901   :  { %1774 = vadd.xlane.f32.xlu0 %v1773_v59 }
 0x917   :  { %1790 = vrot.lane.b32.xlu0 %v2492_v55, %s2267_s29 }
 0x986   :  { %v1772_v11 = vpop.xlane.xlu0 %1771 }
 0x987   :  { %v1782_v46 = vadd.f32 %v1896_v44, %v1772_v11 }
 0x989   :  { %v1803_v49 = vsel %vm1800_vm6, %v1782_v46, %v1793_v45 }
 0x98a   :  { %v1808_v50 = vsel %vm1805_vm7, %v1803_v49, 0.0  ;;  %v1775_v51 = vpop.xlane.xlu0 %1774 }
 0x98b   :  { %1812 = vst [vmem:[%s2712_s3 + $0x10] sm:$0xff] %v1808_v50  ;;  %v1783_v55 = vadd.f32 %v1897_v48, %v1775_v51 }
 0x98d   :  { %v1804_v58 = vsel %vm1800_vm6, %v1783_v55, %v1795_v53 }
 0x98e   :  { %v1809_v60 = vsel %vm1805_vm7, %v1804_v58, 0.0  ;;  %v1791_v61 = vpop.permute.xlu0 %1790 }
 0x98f   :  { %1813 = vst [vmem:[%s2712_s3 + $0x18] sm:$0xff] %v1809_v60  ;;  %v1802_v63 = vsel %vm1800_vm6, %v1781_v57, %v1791_v61 }
 0x990   :  { %v1807_v0 = vsel %vm1805_vm7, %v1802_v63, 0.0 }
 0x991   :  { %1811 = vst [vmem:[%s2712_s3 + $0x8] sm:$0xff] %v1807_v0 }

</bundles_post_ra>
